<compile_context>
chip_gen: v6e
topology: v6e:2x2x1
jax: 0.10.0
libtpu: 0.0.40
codegen_flags: <defaults>
</compile_context>

<pallas_src>
import math

import jax
import jax.numpy as jnp
from jax import lax
from jax.experimental import pallas as pl
from jax.experimental.pallas import tpu as pltpu


_INV_SQRT2 = 1.0 / math.sqrt(2.0)


def _gelu_erf(x):
    return 0.5 * x * (1.0 + lax.erf(x * _INV_SQRT2))


def _softplus(x):
    return jnp.maximum(x, 0.0) + jnp.log1p(jnp.exp(-jnp.abs(x)))


def _round_up(n, m):
    return ((n + m - 1) // m) * m


# ---------------------------------------------------------------------------
# Kernel A: in_proj split into conv branch (x1) and gate branch gelu(z).
# ---------------------------------------------------------------------------
def _in_proj_kernel(x_ref, wx_ref, wz_ref, x1_ref, gz_ref):
    x = x_ref[...].astype(jnp.float32)
    x1 = jnp.dot(x, wx_ref[...], preferred_element_type=jnp.float32)
    z = jnp.dot(x, wz_ref[...], preferred_element_type=jnp.float32)
    x1_ref[...] = x1.astype(x1_ref.dtype)
    gz_ref[...] = _gelu_erf(z).astype(gz_ref.dtype)


def in_proj(x2d, w_x, w_z, *, tm=256):
    n, c = x2d.shape
    d_inner = w_x.shape[1]
    tm_eff = min(tm, _round_up(n, 8))
    n_pad = _round_up(n, tm_eff)
    if n_pad != n:
        x2d = jnp.pad(x2d, ((0, n_pad - n), (0, 0)))

    x1, gz = pl.pallas_call(
        _in_proj_kernel,
        out_shape=(jax.ShapeDtypeStruct((n_pad, d_inner), jnp.float32),
                   jax.ShapeDtypeStruct((n_pad, d_inner), jnp.float32)),
        grid_spec=pltpu.PrefetchScalarGridSpec(
            num_scalar_prefetch=0,
            grid=(n_pad // tm_eff,),
            in_specs=[
                pl.BlockSpec((tm_eff, c), lambda i: (i, 0)),
                pl.BlockSpec((c, d_inner), lambda i: (0, 0)),
                pl.BlockSpec((c, d_inner), lambda i: (0, 0)),
            ],
            out_specs=(
                pl.BlockSpec((tm_eff, d_inner), lambda i: (i, 0)),
                pl.BlockSpec((tm_eff, d_inner), lambda i: (i, 0)),
            ),
        ),
        compiler_params=pltpu.CompilerParams(dimension_semantics=("parallel",)),
    )(x2d, w_x, w_z)
    return x1[:n], gz[:n]


# ---------------------------------------------------------------------------
# Kernel B: depthwise 3x3 conv (padding=1) + SiLU, channels-last layout.
# ---------------------------------------------------------------------------
def _dwconv_silu_kernel(xp_ref, wk_ref, b_ref, o_ref):
    hp = xp_ref.shape[1]
    wp = xp_ref.shape[2]
    c = xp_ref.shape[3]
    h, w = hp - 2, wp - 2

    xp = xp_ref[0].astype(jnp.float32)                      # (H+2, W+2, C)
    acc = jnp.zeros((h, w, c), jnp.float32)
    for di in range(3):
        for dj in range(3):
            tap = xp[di:di + h, dj:dj + w, :]               # (H, W, C)
            acc = acc + tap * wk_ref[di * 3 + dj].astype(jnp.float32)
    acc = acc + b_ref[...].astype(jnp.float32)              # (1, C) broadcast
    y = acc * jax.nn.sigmoid(acc)                           # SiLU (EUP sigmoid)
    o_ref[0] = y.astype(o_ref.dtype)


def dwconv_silu(x1_sp, conv_w_taps, conv_b):
    b, h, w, c = x1_sp.shape
    xp = jnp.pad(x1_sp, ((0, 0), (1, 1), (1, 1), (0, 0)))
    return pl.pallas_call(
        _dwconv_silu_kernel,
        out_shape=jax.ShapeDtypeStruct((b, h, w, c), jnp.float32),
        grid_spec=pltpu.PrefetchScalarGridSpec(
            num_scalar_prefetch=0,
            grid=(b,),
            in_specs=[
                pl.BlockSpec((1, h + 2, w + 2, c), lambda i: (i, 0, 0, 0)),
                pl.BlockSpec((9, 1, c), lambda i: (0, 0, 0)),
                pl.BlockSpec((1, c), lambda i: (0, 0)),
            ],
            out_specs=pl.BlockSpec((1, h, w, c), lambda i: (i, 0, 0, 0)),
        ),
        compiler_params=pltpu.CompilerParams(dimension_semantics=("parallel",)),
    )(xp, conv_w_taps, conv_b)


# ---------------------------------------------------------------------------
# Kernel C: bidirectional selective scan + LayerNorm + gate + out_proj.
#   u layout (L, DS): L = d_inner (scan axis), DS = d_spectral = H*W.
# ---------------------------------------------------------------------------
def _spectral_scan_kernel(u_ref, gz_ref, wdt_ref, dtb_ref, wb_ref, wc_ref,
                          a_ref, dvals_ref, lnw_ref, lnb_ref, wo_ref,
                          o_ref,
                          dlt_ref, du_ref, bp_ref, cp_ref, us_ref, h_ref,
                          yacc_ref):
    seq_len, d_spec = dlt_ref.shape
    n_state = bp_ref.shape[-1]

    u = u_ref[0].astype(jnp.float32)                        # (L, DS)
    us_ref[...] = u
    ones_ns = jnp.ones((1, n_state), jnp.float32)

    yacc_ref[...] = jnp.zeros_like(yacc_ref)

    for k in range(2):                                      # two scan directions (static)
        # input-dependent projections on the MXU (dt projection pre-folded)
        dpre = jnp.dot(u, wdt_ref[k], preferred_element_type=jnp.float32) + dtb_ref[k]
        delta = _softplus(dpre)                             # (L, DS)
        dlt_ref[...] = delta
        du_ref[...] = delta * u
        bp_ref[...] = jnp.dot(u, wb_ref[k], preferred_element_type=jnp.float32)
        cp_ref[...] = jnp.dot(u, wc_ref[k], preferred_element_type=jnp.float32)

        a_k = a_ref[k].astype(jnp.float32)                  # (DS, NS)
        d_k = dvals_ref[k].astype(jnp.float32)              # (1, DS)

        h_ref[...] = jnp.zeros_like(h_ref)

        def scan_step(l, carry, k=k, a_k=a_k, d_k=d_k):
            delta_row = dlt_ref[pl.ds(l, 1), :]             # (1, DS)
            du_row = du_ref[pl.ds(l, 1), :]                 # (1, DS)
            b_row = bp_ref[pl.ds(l, 1), :]                  # (1, NS)
            c_row = cp_ref[pl.ds(l, 1), :]                  # (1, NS)
            u_row = us_ref[pl.ds(l, 1), :]                  # (1, DS)

            # broadcast delta over the state axis as a rank-1 MXU outer product
            delta_b = lax.dot_general(delta_row, ones_ns,
                                      (((0,), (0,)), ((), ())),
                                      preferred_element_type=jnp.float32)   # (DS, NS)
            da = jnp.exp(delta_b * a_k)                                     # (DS, NS)
            dbu = lax.dot_general(du_row, b_row,
                                  (((0,), (0,)), ((), ())),
                                  preferred_element_type=jnp.float32)       # (DS, NS)

            h_new = da * h_ref[...] + dbu
            h_ref[...] = h_new

            y_row = lax.dot_general(c_row, h_new,
                                    (((1,), (1,)), ((), ())),
                                    preferred_element_type=jnp.float32)     # (1, DS)
            y_row = y_row + d_k * u_row

            # direction 1 contributes with its sequence axis reversed
            idx = l if k == 0 else seq_len - 1 - l
            yacc_ref[pl.ds(idx, 1), :] = yacc_ref[pl.ds(idx, 1), :] + y_row
            return carry

        lax.fori_loop(0, seq_len, scan_step, 0)

    # LayerNorm over d_spectral (lane axis), torch eps = 1e-5
    y = yacc_ref[...]
    mean = jnp.mean(y, axis=-1, keepdims=True)
    var = jnp.mean((y - mean) ** 2, axis=-1, keepdims=True)
    yn = (y - mean) * lax.rsqrt(var + 1e-5)
    yn = yn * lnw_ref[...] + lnb_ref[...]                   # (L, DS)

    # gate with gelu(z) and project: out[s, m] = sum_c (yn[c,s]*gz[c,s]) * Wo[c,m]
    g = yn * gz_ref[0].astype(jnp.float32)                  # (L, DS)
    out = lax.dot_general(g, wo_ref[...].astype(jnp.float32),
                          (((0,), (0,)), ((), ())),
                          preferred_element_type=jnp.float32)               # (DS, d_model)
    o_ref[0] = out.astype(o_ref.dtype)


def spectral_scan_gate_proj(u_t, gz_t, wdt, dtb, wb, wc, a_mat, dvals,
                            ln_w, ln_b, wo):
    b, seq_len, d_spec = u_t.shape
    n_state = wb.shape[-1]
    d_model = wo.shape[-1]

    return pl.pallas_call(
        _spectral_scan_kernel,
        out_shape=jax.ShapeDtypeStruct((b, d_spec, d_model), jnp.float32),
        grid_spec=pltpu.PrefetchScalarGridSpec(
            num_scalar_prefetch=0,
            grid=(b,),
            in_specs=[
                pl.BlockSpec((1, seq_len, d_spec), lambda i: (i, 0, 0)),    # u
                pl.BlockSpec((1, seq_len, d_spec), lambda i: (i, 0, 0)),    # gelu(z)
                pl.BlockSpec((2, d_spec, d_spec), lambda i: (0, 0, 0)),     # folded dt proj
                pl.BlockSpec((2, 1, d_spec), lambda i: (0, 0, 0)),          # dt bias
                pl.BlockSpec((2, d_spec, n_state), lambda i: (0, 0, 0)),    # B proj
                pl.BlockSpec((2, d_spec, n_state), lambda i: (0, 0, 0)),    # C proj
                pl.BlockSpec((2, d_spec, n_state), lambda i: (0, 0, 0)),    # A = -exp(A_log)
                pl.BlockSpec((2, 1, d_spec), lambda i: (0, 0, 0)),          # D
                pl.BlockSpec((1, d_spec), lambda i: (0, 0)),                # LN weight
                pl.BlockSpec((1, d_spec), lambda i: (0, 0)),                # LN bias
                pl.BlockSpec((seq_len, d_model), lambda i: (0, 0)),         # out_proj
            ],
            out_specs=pl.BlockSpec((1, d_spec, d_model), lambda i: (i, 0, 0)),
            scratch_shapes=[
                pltpu.VMEM((seq_len, d_spec), jnp.float32),   # delta
                pltpu.VMEM((seq_len, d_spec), jnp.float32),   # delta * u
                pltpu.VMEM((seq_len, n_state), jnp.float32),  # B projection
                pltpu.VMEM((seq_len, n_state), jnp.float32),  # C projection
                pltpu.VMEM((seq_len, d_spec), jnp.float32),   # u copy
                pltpu.VMEM((d_spec, n_state), jnp.float32),   # scan state h
                pltpu.VMEM((seq_len, d_spec), jnp.float32),   # combined y
            ],
        ),
        compiler_params=pltpu.CompilerParams(dimension_semantics=("parallel",)),
    )(u_t, gz_t, wdt, dtb, wb, wc, a_mat, dvals, ln_w, ln_b, wo)


# ---------------------------------------------------------------------------
# Host-side weight folding and full forward.
# ---------------------------------------------------------------------------
def prepare_params(raw):
    in_w = raw["in_proj_w"]                        # (2*d_inner, d_model) torch layout
    d_inner = in_w.shape[0] // 2
    dt_rank = raw["dt_w"].shape[-1]
    d_state = (raw["x_proj_w"].shape[1] - dt_rank) // 2
    d_spec = raw["x_proj_w"].shape[2]

    w_in = in_w.T                                  # (d_model, 2*d_inner)
    params = {
        "w_in_x": w_in[:, :d_inner],
        "w_in_z": w_in[:, d_inner:],
        "conv_w_taps": jnp.transpose(raw["conv_w"][:, 0], (1, 2, 0)).reshape(9, 1, d_inner),
        "conv_b": raw["conv_b"].reshape(1, d_inner),
    }

    wdt, wb, wc = [], [], []
    for k in range(2):
        xw_k = raw["x_proj_w"][k]                  # (dt_rank + 2*NS, DS)
        folded = raw["dt_w"][k] @ xw_k[:dt_rank]   # (DS_out, DS_in) folded dt projection
        wdt.append(folded.T)
        wb.append(xw_k[dt_rank:dt_rank + d_state].T)
        wc.append(xw_k[dt_rank + d_state:].T)
    params.update(
        wdt=jnp.stack(wdt),                        # (2, DS, DS)
        wb=jnp.stack(wb),                          # (2, DS, NS)
        wc=jnp.stack(wc),                          # (2, DS, NS)
        a_mat=-jnp.exp(raw["A_log"]),              # (2, DS, NS)
        dt_bias=raw["dt_bias"].reshape(2, 1, d_spec),
        d_vals=raw["D"].reshape(2, 1, d_spec),
        ln_w=raw["ln_w"].reshape(1, d_spec),
        ln_b=raw["ln_b"].reshape(1, d_spec),
        w_out=raw["out_proj_w"].T,                 # (d_inner, d_model)
    )
    return params


@jax.jit
def bss_forward(x, params):
    B, H, W, _ = x.shape
    d_inner = params["w_in_x"].shape[1]
    d_model = params["w_out"].shape[1]

    x1, gz = in_proj(x.reshape(B * H * W, -1), params["w_in_x"], params["w_in_z"])
    a = dwconv_silu(x1.reshape(B, H, W, d_inner), params["conv_w_taps"],
                    params["conv_b"])

    # spectral scan: sequence axis = channel axis (d_inner), features = H*W
    u_t = jnp.transpose(a.reshape(B, H * W, d_inner), (0, 2, 1))
    gz_t = jnp.transpose(gz.reshape(B, H * W, d_inner), (0, 2, 1))

    out = spectral_scan_gate_proj(
        u_t, gz_t, params["wdt"], params["dt_bias"], params["wb"], params["wc"],
        params["a_mat"], params["d_vals"], params["ln_w"], params["ln_b"],
        params["w_out"])
    return out.reshape(B, H, W, d_model)


# ---------------------------------------------------------------------------
# Pure-JAX reference (direct translation of the PyTorch forward).
# ---------------------------------------------------------------------------
def bss_reference(x, raw):
    B, H, W, _ = x.shape
    d_inner = raw["in_proj_w"].shape[0] // 2
    dt_rank = raw["dt_w"].shape[-1]
    d_state = (raw["x_proj_w"].shape[1] - dt_rank) // 2
    d_spec = raw["x_proj_w"].shape[2]

    xz = x @ raw["in_proj_w"].T
    x1, z = xz[..., :d_inner], xz[..., d_inner:]

    xp = jnp.pad(x1, ((0, 0), (1, 1), (1, 1), (0, 0)))
    conv_w_cl = jnp.transpose(raw["conv_w"][:, 0], (1, 2, 0))
    acc = jnp.zeros_like(x1)
    for i in range(3):
        for j in range(3):
            acc = acc + xp[:, i:i + H, j:j + W, :] * conv_w_cl[i, j]
    acc = acc + raw["conv_b"]
    a = acc * jax.nn.sigmoid(acc)

    u = a.reshape(B, H * W, d_inner)               # (B, DS, L)
    ys = []
    for k in range(2):
        xw = raw["x_proj_w"][k]
        x_dbl = jnp.einsum('bdl,cd->bcl', u, xw)
        dts = x_dbl[:, :dt_rank]
        Bs = x_dbl[:, dt_rank:dt_rank + d_state]
        Cs = x_dbl[:, dt_rank + d_state:]
        dt = jnp.einsum('brl,dr->bdl', dts, raw["dt_w"][k])
        delta = _softplus(dt + raw["dt_bias"][k][None, :, None])
        A = -jnp.exp(raw["A_log"][k])              # (DS, NS)

        def step(h, inp, A=A, Dk=raw["D"][k]):
            d_l, b_l, c_l, u_l = inp
            h = jnp.exp(d_l[..., None] * A) * h + \
                d_l[..., None] * u_l[..., None] * b_l[:, None, :]
            y = jnp.einsum('bdn,bn->bd', h, c_l) + Dk * u_l
            return h, y

        h0 = jnp.zeros((B, d_spec, d_state), jnp.float32)
        _, y_seq = jax.lax.scan(
            step, h0,
            (jnp.moveaxis(delta, -1, 0), jnp.moveaxis(Bs, -1, 0),
             jnp.moveaxis(Cs, -1, 0), jnp.moveaxis(u, -1, 0)))
        ys.append(jnp.moveaxis(y_seq, 0, -1))      # (B, DS, L)

    y = ys[0] + jnp.flip(ys[1], axis=-1)
    yt = jnp.swapaxes(y, 1, 2)                     # (B, L, DS)
    mean = yt.mean(-1, keepdims=True)
    var = ((yt - mean) ** 2).mean(-1, keepdims=True)
    yn = (yt - mean) / jnp.sqrt(var + 1e-5) * raw["ln_w"] + raw["ln_b"]
    y_spec = jnp.swapaxes(yn, 1, 2).reshape(B, H, W, d_inner)

    gz = _gelu_erf(z)
    return (y_spec * gz) @ raw["out_proj_w"].T


if __name__ == "__main__":
    # Small, BSS-consistent shapes: d_spectral must equal H*W.
    B, Hs, Ws = 2, 4, 4
    d_model = 16
    d_state = 8
    expand = 2
    d_inner = expand * d_model                     # 32
    dt_rank = max(1, math.ceil(d_model / 16))      # 1
    d_spectral = Hs * Ws                           # 16

    key = jax.random.PRNGKey(0)
    ks = jax.random.split(key, 8)

    x = jax.random.normal(ks[0], (B, Hs, Ws, d_model), jnp.float32)

    lim_in = 1.0 / math.sqrt(d_model)
    in_proj_w = jax.random.uniform(ks[1], (2 * d_inner, d_model), jnp.float32,
                                   -lim_in, lim_in)
    conv_w = jax.random.uniform(ks[2], (d_inner, 1, 3, 3), jnp.float32,
                                -1.0 / 3.0, 1.0 / 3.0)
    conv_b = jax.random.uniform(ks[3], (d_inner,), jnp.float32,
                                -1.0 / 3.0, 1.0 / 3.0)
    lim_xp = 1.0 / math.sqrt(d_spectral)
    x_proj_w = jax.random.uniform(ks[4], (2, dt_rank + 2 * d_state, d_spectral),
                                  jnp.float32, -lim_xp, lim_xp)
    dt_std = dt_rank ** -0.5
    dt_w = jax.random.uniform(ks[5], (2, d_spectral, dt_rank), jnp.float32,
                              -dt_std, dt_std)
    dt = jnp.exp(jax.random.uniform(ks[6], (2, d_spectral), jnp.float32)
                 * (math.log(0.1) - math.log(0.001)) + math.log(0.001))
    dt = jnp.maximum(dt, 1e-4)
    dt_bias = dt + jnp.log(-jnp.expm1(-dt))
    A_log = jnp.log(jnp.broadcast_to(
        jnp.arange(1, d_state + 1, dtype=jnp.float32),
        (2, d_spectral, d_state)))
    D = jnp.ones((2, d_spectral), jnp.float32)
    ln_w = jnp.ones((d_spectral,), jnp.float32)
    ln_b = jnp.zeros((d_spectral,), jnp.float32)
    lim_out = 1.0 / math.sqrt(d_inner)
    out_proj_w = jax.random.uniform(ks[7], (d_model, d_inner), jnp.float32,
                                    -lim_out, lim_out)

    raw = dict(in_proj_w=in_proj_w, conv_w=conv_w, conv_b=conv_b,
               x_proj_w=x_proj_w, dt_w=dt_w, dt_bias=dt_bias, A_log=A_log,
               D=D, ln_w=ln_w, ln_b=ln_b, out_proj_w=out_proj_w)

    params = prepare_params(raw)
    out = bss_forward(x, params)
    out = jax.block_until_ready(out)

    ref = bss_reference(x, raw)
    assert out.shape == (B, Hs, Ws, d_model), out.shape
    assert jnp.allclose(out, ref, atol=5e-3, rtol=5e-3), \
        float(jnp.max(jnp.abs(out - ref)))

    print("KERNEL_OK")
</pallas_src>

<mosaic_0001>
module attributes {stable_mosaic.version = 11 : i64} {
  func.func @_in_proj_kernel(%arg0: i32, %arg1: memref<32x16xf32, #tpu.memory_space<vmem>>, %arg2: memref<16x32xf32, #tpu.memory_space<vmem>>, %arg3: memref<16x32xf32, #tpu.memory_space<vmem>>, %arg4: memref<32x32xf32, #tpu.memory_space<vmem>>, %arg5: memref<32x32xf32, #tpu.memory_space<vmem>>) attributes {dimension_semantics = [#tpu.dimension_semantics<parallel>], iteration_bounds = array<i64: 1>, scalar_prefetch = 0 : i64, scratch_operands = 0 : i64, tpu.core_type = #tpu.core_type<tc>, window_params = [{transform_indices = @transform_0, window_bounds = array<i64: 32, 16>}, {pipeline_mode = #tpu.pipeline_mode<synchronous>, transform_indices = @transform_1, window_bounds = array<i64: 16, 32>}, {pipeline_mode = #tpu.pipeline_mode<synchronous>, transform_indices = @transform_2, window_bounds = array<i64: 16, 32>}, {transform_indices = @transform_3, window_bounds = array<i64: 32, 32>}, {transform_indices = @transform_4, window_bounds = array<i64: 32, 32>}]} {
    %c0 = arith.constant 0 : index
    %c0_0 = arith.constant 0 : index
    %0 = vector.load %arg1[%c0, %c0_0] : memref<32x16xf32, #tpu.memory_space<vmem>>, vector<32x16xf32>
    %c0_1 = arith.constant 0 : index
    %c0_2 = arith.constant 0 : index
    %1 = vector.load %arg2[%c0_1, %c0_2] : memref<16x32xf32, #tpu.memory_space<vmem>>, vector<16x32xf32>
    %cst = arith.constant dense<0.000000e+00> : vector<32x32xf32>
    %2 = tpu.matmul %0, %1, %cst {dimension_numbers = #tpu.dot_dimension_numbers<[1], [0], [0], [1], [0, 0, 1, 1], [], []>} : vector<32x16xf32>, vector<16x32xf32>, vector<32x32xf32> -> vector<32x32xf32>
    %c0_3 = arith.constant 0 : index
    %c0_4 = arith.constant 0 : index
    %3 = vector.load %arg3[%c0_3, %c0_4] : memref<16x32xf32, #tpu.memory_space<vmem>>, vector<16x32xf32>
    %cst_5 = arith.constant dense<0.000000e+00> : vector<32x32xf32>
    %4 = tpu.matmul %0, %3, %cst_5 {dimension_numbers = #tpu.dot_dimension_numbers<[1], [0], [0], [1], [0, 0, 1, 1], [], []>} : vector<32x16xf32>, vector<16x32xf32>, vector<32x32xf32> -> vector<32x32xf32>
    %c0_6 = arith.constant 0 : index
    %c0_7 = arith.constant 0 : index
    %5 = vector.load %arg4[%c0_6, %c0_7] : memref<32x32xf32, #tpu.memory_space<vmem>>, vector<32x32xf32>
    tpu.vector_store %arg4[%c0_6, %c0_7], %2 {strides = array<i32>} : memref<32x32xf32, #tpu.memory_space<vmem>>, vector<32x32xf32>,
    %cst_8 = arith.constant 5.000000e-01 : f32
    %6 = vector.broadcast %cst_8 : f32 to vector<32x32xf32>
    %7 = arith.mulf %6, %4 : vector<32x32xf32>
    %cst_9 = arith.constant 0.707106769 : f32
    %8 = vector.broadcast %cst_9 : f32 to vector<32x32xf32>
    %9 = arith.mulf %4, %8 : vector<32x32xf32>
    %10 = math.erf %9 : vector<32x32xf32>
    %cst_10 = arith.constant 1.000000e+00 : f32
    %11 = vector.broadcast %cst_10 : f32 to vector<32x32xf32>
    %12 = arith.addf %11, %10 : vector<32x32xf32>
    %13 = arith.mulf %7, %12 : vector<32x32xf32>
    %c0_11 = arith.constant 0 : index
    %c0_12 = arith.constant 0 : index
    %14 = vector.load %arg5[%c0_11, %c0_12] : memref<32x32xf32, #tpu.memory_space<vmem>>, vector<32x32xf32>
    tpu.vector_store %arg5[%c0_11, %c0_12], %13 {strides = array<i32>} : memref<32x32xf32, #tpu.memory_space<vmem>>, vector<32x32xf32>,
    return
  }
  func.func @transform_0(%arg0: i32) -> (i32, i32) {
    %c0_i32 = arith.constant 0 : i32
    %c0_i32_0 = arith.constant 0 : i32
    return %arg0, %c0_i32 : i32, i32
  }
  func.func @transform_1(%arg0: i32) -> (i32, i32) {
    %c0_i32 = arith.constant 0 : i32
    %c0_i32_0 = arith.constant 0 : i32
    %c0_i32_1 = arith.constant 0 : i32
    return %c0_i32, %c0_i32_0 : i32, i32
  }
  func.func @transform_2(%arg0: i32) -> (i32, i32) {
    %c0_i32 = arith.constant 0 : i32
    %c0_i32_0 = arith.constant 0 : i32
    %c0_i32_1 = arith.constant 0 : i32
    return %c0_i32, %c0_i32_0 : i32, i32
  }
  func.func @transform_3(%arg0: i32) -> (i32, i32) {
    %c0_i32 = arith.constant 0 : i32
    %c0_i32_0 = arith.constant 0 : i32
    return %arg0, %c0_i32 : i32, i32
  }
  func.func @transform_4(%arg0: i32) -> (i32, i32) {
    %c0_i32 = arith.constant 0 : i32
    %c0_i32_0 = arith.constant 0 : i32
    return %arg0, %c0_i32 : i32, i32
  }
}

module attributes {stable_mosaic.version = 11 : i64} {
  func.func @_dwconv_silu_kernel(%arg0: i32, %arg1: memref<1x6x6x32xf32, #tpu.memory_space<vmem>>, %arg2: memref<9x1x32xf32, #tpu.memory_space<vmem>>, %arg3: memref<1x32xf32, #tpu.memory_space<vmem>>, %arg4: memref<1x4x4x32xf32, #tpu.memory_space<vmem>>) attributes {dimension_semantics = [#tpu.dimension_semantics<parallel>], iteration_bounds = array<i64: 2>, scalar_prefetch = 0 : i64, scratch_operands = 0 : i64, tpu.core_type = #tpu.core_type<tc>, window_params = [{transform_indices = @transform_0, window_bounds = array<i64: 1, 6, 6, 32>}, {pipeline_mode = #tpu.pipeline_mode<synchronous>, transform_indices = @transform_1, window_bounds = array<i64: 9, 1, 32>}, {pipeline_mode = #tpu.pipeline_mode<synchronous>, transform_indices = @transform_2, window_bounds = array<i64: 1, 32>}, {transform_indices = @transform_3, window_bounds = array<i64: 1, 4, 4, 32>}]} {
    %c0 = arith.constant 0 : index
    %c0_0 = arith.constant 0 : index
    %c0_1 = arith.constant 0 : index
    %c0_2 = arith.constant 0 : index
    %0 = vector.load %arg1[%c0, %c0_0, %c0_1, %c0_2] : memref<1x6x6x32xf32, #tpu.memory_space<vmem>>, vector<1x6x6x32xf32>
    %1 = vector.shape_cast %0 : vector<1x6x6x32xf32> to vector<6x6x32xf32>
    %cst = arith.constant 0.000000e+00 : f32
    %2 = vector.broadcast %cst : f32 to vector<4x4x32xf32>
    %3 = vector.extract_strided_slice %1 {offsets = [0, 0, 0], sizes = [4, 4, 32], strides = [1, 1, 1]} : vector<6x6x32xf32> to vector<4x4x32xf32>
    %c0_3 = arith.constant 0 : index
    %c0_4 = arith.constant 0 : index
    %c0_5 = arith.constant 0 : index
    %4 = vector.load %arg2[%c0_3, %c0_4, %c0_5] : memref<9x1x32xf32, #tpu.memory_space<vmem>>, vector<1x1x32xf32>
    %5 = vector.shape_cast %4 : vector<1x1x32xf32> to vector<1x32xf32>
    %6 = vector.shape_cast %5 : vector<1x32xf32> to vector<1x1x32xf32>
    %7 = vector.broadcast %6 : vector<1x1x32xf32> to vector<4x4x32xf32>
    %8 = arith.mulf %3, %7 : vector<4x4x32xf32>
    %9 = arith.addf %2, %8 : vector<4x4x32xf32>
    %10 = vector.extract_strided_slice %1 {offsets = [0, 1, 0], sizes = [4, 4, 32], strides = [1, 1, 1]} : vector<6x6x32xf32> to vector<4x4x32xf32>
    %c1 = arith.constant 1 : index
    %c0_6 = arith.constant 0 : index
    %c0_7 = arith.constant 0 : index
    %11 = vector.load %arg2[%c1, %c0_6, %c0_7] : memref<9x1x32xf32, #tpu.memory_space<vmem>>, vector<1x1x32xf32>
    %12 = vector.shape_cast %11 : vector<1x1x32xf32> to vector<1x32xf32>
    %13 = vector.shape_cast %12 : vector<1x32xf32> to vector<1x1x32xf32>
    %14 = vector.broadcast %13 : vector<1x1x32xf32> to vector<4x4x32xf32>
    %15 = arith.mulf %10, %14 : vector<4x4x32xf32>
    %16 = arith.addf %9, %15 : vector<4x4x32xf32>
    %17 = vector.extract_strided_slice %1 {offsets = [0, 2, 0], sizes = [4, 4, 32], strides = [1, 1, 1]} : vector<6x6x32xf32> to vector<4x4x32xf32>
    %c2 = arith.constant 2 : index
    %c0_8 = arith.constant 0 : index
    %c0_9 = arith.constant 0 : index
    %18 = vector.load %arg2[%c2, %c0_8, %c0_9] : memref<9x1x32xf32, #tpu.memory_space<vmem>>, vector<1x1x32xf32>
    %19 = vector.shape_cast %18 : vector<1x1x32xf32> to vector<1x32xf32>
    %20 = vector.shape_cast %19 : vector<1x32xf32> to vector<1x1x32xf32>
    %21 = vector.broadcast %20 : vector<1x1x32xf32> to vector<4x4x32xf32>
    %22 = arith.mulf %17, %21 : vector<4x4x32xf32>
    %23 = arith.addf %16, %22 : vector<4x4x32xf32>
    %24 = vector.extract_strided_slice %1 {offsets = [1, 0, 0], sizes = [4, 4, 32], strides = [1, 1, 1]} : vector<6x6x32xf32> to vector<4x4x32xf32>
    %c3 = arith.constant 3 : index
    %c0_10 = arith.constant 0 : index
    %c0_11 = arith.constant 0 : index
    %25 = vector.load %arg2[%c3, %c0_10, %c0_11] : memref<9x1x32xf32, #tpu.memory_space<vmem>>, vector<1x1x32xf32>
    %26 = vector.shape_cast %25 : vector<1x1x32xf32> to vector<1x32xf32>
    %27 = vector.shape_cast %26 : vector<1x32xf32> to vector<1x1x32xf32>
    %28 = vector.broadcast %27 : vector<1x1x32xf32> to vector<4x4x32xf32>
    %29 = arith.mulf %24, %28 : vector<4x4x32xf32>
    %30 = arith.addf %23, %29 : vector<4x4x32xf32>
    %31 = vector.extract_strided_slice %1 {offsets = [1, 1, 0], sizes = [4, 4, 32], strides = [1, 1, 1]} : vector<6x6x32xf32> to vector<4x4x32xf32>
    %c4 = arith.constant 4 : index
    %c0_12 = arith.constant 0 : index
    %c0_13 = arith.constant 0 : index
    %32 = vector.load %arg2[%c4, %c0_12, %c0_13] : memref<9x1x32xf32, #tpu.memory_space<vmem>>, vector<1x1x32xf32>
    %33 = vector.shape_cast %32 : vector<1x1x32xf32> to vector<1x32xf32>
    %34 = vector.shape_cast %33 : vector<1x32xf32> to vector<1x1x32xf32>
    %35 = vector.broadcast %34 : vector<1x1x32xf32> to vector<4x4x32xf32>
    %36 = arith.mulf %31, %35 : vector<4x4x32xf32>
    %37 = arith.addf %30, %36 : vector<4x4x32xf32>
    %38 = vector.extract_strided_slice %1 {offsets = [1, 2, 0], sizes = [4, 4, 32], strides = [1, 1, 1]} : vector<6x6x32xf32> to vector<4x4x32xf32>
    %c5 = arith.constant 5 : index
    %c0_14 = arith.constant 0 : index
    %c0_15 = arith.constant 0 : index
    %39 = vector.load %arg2[%c5, %c0_14, %c0_15] : memref<9x1x32xf32, #tpu.memory_space<vmem>>, vector<1x1x32xf32>
    %40 = vector.shape_cast %39 : vector<1x1x32xf32> to vector<1x32xf32>
    %41 = vector.shape_cast %40 : vector<1x32xf32> to vector<1x1x32xf32>
    %42 = vector.broadcast %41 : vector<1x1x32xf32> to vector<4x4x32xf32>
    %43 = arith.mulf %38, %42 : vector<4x4x32xf32>
    %44 = arith.addf %37, %43 : vector<4x4x32xf32>
    %45 = vector.extract_strided_slice %1 {offsets = [2, 0, 0], sizes = [4, 4, 32], strides = [1, 1, 1]} : vector<6x6x32xf32> to vector<4x4x32xf32>
    %c6 = arith.constant 6 : index
    %c0_16 = arith.constant 0 : index
    %c0_17 = arith.constant 0 : index
    %46 = vector.load %arg2[%c6, %c0_16, %c0_17] : memref<9x1x32xf32, #tpu.memory_space<vmem>>, vector<1x1x32xf32>
    %47 = vector.shape_cast %46 : vector<1x1x32xf32> to vector<1x32xf32>
    %48 = vector.shape_cast %47 : vector<1x32xf32> to vector<1x1x32xf32>
    %49 = vector.broadcast %48 : vector<1x1x32xf32> to vector<4x4x32xf32>
    %50 = arith.mulf %45, %49 : vector<4x4x32xf32>
    %51 = arith.addf %44, %50 : vector<4x4x32xf32>
    %52 = vector.extract_strided_slice %1 {offsets = [2, 1, 0], sizes = [4, 4, 32], strides = [1, 1, 1]} : vector<6x6x32xf32> to vector<4x4x32xf32>
    %c7 = arith.constant 7 : index
    %c0_18 = arith.constant 0 : index
    %c0_19 = arith.constant 0 : index
    %53 = vector.load %arg2[%c7, %c0_18, %c0_19] : memref<9x1x32xf32, #tpu.memory_space<vmem>>, vector<1x1x32xf32>
    %54 = vector.shape_cast %53 : vector<1x1x32xf32> to vector<1x32xf32>
    %55 = vector.shape_cast %54 : vector<1x32xf32> to vector<1x1x32xf32>
    %56 = vector.broadcast %55 : vector<1x1x32xf32> to vector<4x4x32xf32>
    %57 = arith.mulf %52, %56 : vector<4x4x32xf32>
    %58 = arith.addf %51, %57 : vector<4x4x32xf32>
    %59 = vector.extract_strided_slice %1 {offsets = [2, 2, 0], sizes = [4, 4, 32], strides = [1, 1, 1]} : vector<6x6x32xf32> to vector<4x4x32xf32>
    %c8 = arith.constant 8 : index
    %c0_20 = arith.constant 0 : index
    %c0_21 = arith.constant 0 : index
    %60 = vector.load %arg2[%c8, %c0_20, %c0_21] : memref<9x1x32xf32, #tpu.memory_space<vmem>>, vector<1x1x32xf32>
    %61 = vector.shape_cast %60 : vector<1x1x32xf32> to vector<1x32xf32>
    %62 = vector.shape_cast %61 : vector<1x32xf32> to vector<1x1x32xf32>
    %63 = vector.broadcast %62 : vector<1x1x32xf32> to vector<4x4x32xf32>
    %64 = arith.mulf %59, %63 : vector<4x4x32xf32>
    %65 = arith.addf %58, %64 : vector<4x4x32xf32>
    %c0_22 = arith.constant 0 : index
    %c0_23 = arith.constant 0 : index
    %66 = vector.load %arg3[%c0_22, %c0_23] : memref<1x32xf32, #tpu.memory_space<vmem>>, vector<1x32xf32>
    %67 = vector.shape_cast %66 : vector<1x32xf32> to vector<1x1x32xf32>
    %68 = vector.broadcast %67 : vector<1x1x32xf32> to vector<4x4x32xf32>
    %69 = arith.addf %65, %68 : vector<4x4x32xf32>
    %70 = arith.negf %69 : vector<4x4x32xf32>
    %71 = math.exp %70 : vector<4x4x32xf32>
    %cst_24 = arith.constant 1.000000e+00 : f32
    %72 = vector.broadcast %cst_24 : f32 to vector<4x4x32xf32>
    %73 = arith.addf %72, %71 : vector<4x4x32xf32>
    %74 = arith.divf %72, %73 : vector<4x4x32xf32>
    %75 = arith.mulf %69, %74 : vector<4x4x32xf32>
    %c0_25 = arith.constant 0 : index
    %c0_26 = arith.constant 0 : index
    %c0_27 = arith.constant 0 : index
    %c0_28 = arith.constant 0 : index
    %76 = vector.load %arg4[%c0_25, %c0_26, %c0_27, %c0_28] : memref<1x4x4x32xf32, #tpu.memory_space<vmem>>, vector<1x4x4x32xf32>
    %77 = vector.shape_cast %76 : vector<1x4x4x32xf32> to vector<4x4x32xf32>
    %78 = vector.shape_cast %75 : vector<4x4x32xf32> to vector<1x4x4x32xf32>
    tpu.vector_store %arg4[%c0_25, %c0_26, %c0_27, %c0_28], %78 {strides = array<i32>} : memref<1x4x4x32xf32, #tpu.memory_space<vmem>>, vector<1x4x4x32xf32>,
    return
  }
  func.func @transform_0(%arg0: i32) -> (i32, i32, i32, i32) {
    %c0_i32 = arith.constant 0 : i32
    %c0_i32_0 = arith.constant 0 : i32
    %c0_i32_1 = arith.constant 0 : i32
    %c0_i32_2 = arith.constant 0 : i32
    return %arg0, %c0_i32, %c0_i32_0, %c0_i32_1 : i32, i32, i32, i32
  }
  func.func @transform_1(%arg0: i32) -> (i32, i32, i32) {
    %c0_i32 = arith.constant 0 : i32
    %c0_i32_0 = arith.constant 0 : i32
    %c0_i32_1 = arith.constant 0 : i32
    %c0_i32_2 = arith.constant 0 : i32
    return %c0_i32, %c0_i32_0, %c0_i32_1 : i32, i32, i32
  }
  func.func @transform_2(%arg0: i32) -> (i32, i32) {
    %c0_i32 = arith.constant 0 : i32
    %c0_i32_0 = arith.constant 0 : i32
    %c0_i32_1 = arith.constant 0 : i32
    return %c0_i32, %c0_i32_0 : i32, i32
  }
  func.func @transform_3(%arg0: i32) -> (i32, i32, i32, i32) {
    %c0_i32 = arith.constant 0 : i32
    %c0_i32_0 = arith.constant 0 : i32
    %c0_i32_1 = arith.constant 0 : i32
    %c0_i32_2 = arith.constant 0 : i32
    return %arg0, %c0_i32, %c0_i32_0, %c0_i32_1 : i32, i32, i32, i32
  }
}

module attributes {stable_mosaic.version = 11 : i64} {
  func.func @_spectral_scan_kernel(%arg0: i32, %arg1: memref<1x32x16xf32, #tpu.memory_space<vmem>>, %arg2: memref<1x32x16xf32, #tpu.memory_space<vmem>>, %arg3: memref<2x16x16xf32, #tpu.memory_space<vmem>>, %arg4: memref<2x1x16xf32, #tpu.memory_space<vmem>>, %arg5: memref<2x16x8xf32, #tpu.memory_space<vmem>>, %arg6: memref<2x16x8xf32, #tpu.memory_space<vmem>>, %arg7: memref<2x16x8xf32, #tpu.memory_space<vmem>>, %arg8: memref<2x1x16xf32, #tpu.memory_space<vmem>>, %arg9: memref<1x16xf32, #tpu.memory_space<vmem>>, %arg10: memref<1x16xf32, #tpu.memory_space<vmem>>, %arg11: memref<32x16xf32, #tpu.memory_space<vmem>>, %arg12: memref<1x16x16xf32, #tpu.memory_space<vmem>>, %arg13: memref<32x16xf32, #tpu.memory_space<vmem>>, %arg14: memref<32x16xf32, #tpu.memory_space<vmem>>, %arg15: memref<32x8xf32, #tpu.memory_space<vmem>>, %arg16: memref<32x8xf32, #tpu.memory_space<vmem>>, %arg17: memref<32x16xf32, #tpu.memory_space<vmem>>, %arg18: memref<16x8xf32, #tpu.memory_space<vmem>>, %arg19: memref<32x16xf32, #tpu.memory_space<vmem>>) attributes {dimension_semantics = [#tpu.dimension_semantics<parallel>], iteration_bounds = array<i64: 2>, scalar_prefetch = 0 : i64, scratch_operands = 7 : i64, tpu.core_type = #tpu.core_type<tc>, window_params = [{transform_indices = @transform_0, window_bounds = array<i64: 1, 32, 16>}, {transform_indices = @transform_1, window_bounds = array<i64: 1, 32, 16>}, {pipeline_mode = #tpu.pipeline_mode<synchronous>, transform_indices = @transform_2, window_bounds = array<i64: 2, 16, 16>}, {pipeline_mode = #tpu.pipeline_mode<synchronous>, transform_indices = @transform_3, window_bounds = array<i64: 2, 1, 16>}, {pipeline_mode = #tpu.pipeline_mode<synchronous>, transform_indices = @transform_4, window_bounds = array<i64: 2, 16, 8>}, {pipeline_mode = #tpu.pipeline_mode<synchronous>, transform_indices = @transform_5, window_bounds = array<i64: 2, 16, 8>}, {pipeline_mode = #tpu.pipeline_mode<synchronous>, transform_indices = @transform_6, window_bounds = array<i64: 2, 16, 8>}, {pipeline_mode = #tpu.pipeline_mode<synchronous>, transform_indices = @transform_7, window_bounds = array<i64: 2, 1, 16>}, {pipeline_mode = #tpu.pipeline_mode<synchronous>, transform_indices = @transform_8, window_bounds = array<i64: 1, 16>}, {pipeline_mode = #tpu.pipeline_mode<synchronous>, transform_indices = @transform_9, window_bounds = array<i64: 1, 16>}, {pipeline_mode = #tpu.pipeline_mode<synchronous>, transform_indices = @transform_10, window_bounds = array<i64: 32, 16>}, {transform_indices = @transform_11, window_bounds = array<i64: 1, 16, 16>}]} {
    %c0 = arith.constant 0 : index
    %c0_0 = arith.constant 0 : index
    %c0_1 = arith.constant 0 : index
    %0 = vector.load %arg1[%c0, %c0_0, %c0_1] : memref<1x32x16xf32, #tpu.memory_space<vmem>>, vector<1x32x16xf32>
    %1 = vector.shape_cast %0 : vector<1x32x16xf32> to vector<32x16xf32>
    %c0_2 = arith.constant 0 : index
    %c0_3 = arith.constant 0 : index
    %2 = vector.load %arg17[%c0_2, %c0_3] : memref<32x16xf32, #tpu.memory_space<vmem>>, vector<32x16xf32>
    tpu.vector_store %arg17[%c0_2, %c0_3], %1 {strides = array<i32>} : memref<32x16xf32, #tpu.memory_space<vmem>>, vector<32x16xf32>,
    %cst = arith.constant 1.000000e+00 : f32
    %3 = vector.broadcast %cst : f32 to vector<1x8xf32>
    %cst_4 = arith.constant 0.000000e+00 : f32
    %4 = vector.broadcast %cst_4 : f32 to vector<32x16xf32>
    %c0_5 = arith.constant 0 : index
    %c0_6 = arith.constant 0 : index
    %5 = vector.load %arg19[%c0_5, %c0_6] : memref<32x16xf32, #tpu.memory_space<vmem>>, vector<32x16xf32>
    tpu.vector_store %arg19[%c0_5, %c0_6], %4 {strides = array<i32>} : memref<32x16xf32, #tpu.memory_space<vmem>>, vector<32x16xf32>,
    %c0_7 = arith.constant 0 : index
    %c0_8 = arith.constant 0 : index
    %c0_9 = arith.constant 0 : index
    %6 = vector.load %arg3[%c0_7, %c0_8, %c0_9] : memref<2x16x16xf32, #tpu.memory_space<vmem>>, vector<1x16x16xf32>
    %7 = vector.shape_cast %6 : vector<1x16x16xf32> to vector<16x16xf32>
    %cst_10 = arith.constant dense<0.000000e+00> : vector<32x16xf32>
    %8 = tpu.matmul %1, %7, %cst_10 {dimension_numbers = #tpu.dot_dimension_numbers<[1], [0], [0], [1], [0, 0, 1, 1], [], []>} : vector<32x16xf32>, vector<16x16xf32>, vector<32x16xf32> -> vector<32x16xf32>
    %c0_11 = arith.constant 0 : index
    %c0_12 = arith.constant 0 : index
    %c0_13 = arith.constant 0 : index
    %9 = vector.load %arg4[%c0_11, %c0_12, %c0_13] : memref<2x1x16xf32, #tpu.memory_space<vmem>>, vector<1x1x16xf32>
    %10 = vector.shape_cast %9 : vector<1x1x16xf32> to vector<1x16xf32>
    %11 = vector.broadcast %10 : vector<1x16xf32> to vector<32x16xf32>
    %12 = arith.addf %8, %11 : vector<32x16xf32>
    %cst_14 = arith.constant 0.000000e+00 : f32
    %13 = vector.broadcast %cst_14 : f32 to vector<32x16xf32>
    %14 = arith.maximumf %12, %13 : vector<32x16xf32>
    %15 = math.absf %12 : vector<32x16xf32>
    %cst_15 = arith.constant 0.000000e+00 : f32
    %16 = vector.broadcast %cst_15 : f32 to vector<32x16xf32>
    %17 = arith.subf %16, %15 : vector<32x16xf32>
    %18 = math.exp %17 : vector<32x16xf32>
    %19 = math.log1p %18 : vector<32x16xf32>
    %20 = arith.addf %14, %19 : vector<32x16xf32>
    %c0_16 = arith.constant 0 : index
    %c0_17 = arith.constant 0 : index
    %21 = vector.load %arg13[%c0_16, %c0_17] : memref<32x16xf32, #tpu.memory_space<vmem>>, vector<32x16xf32>
    tpu.vector_store %arg13[%c0_16, %c0_17], %20 {strides = array<i32>} : memref<32x16xf32, #tpu.memory_space<vmem>>, vector<32x16xf32>,
    %22 = arith.mulf %20, %1 : vector<32x16xf32>
    %c0_18 = arith.constant 0 : index
    %c0_19 = arith.constant 0 : index
    %23 = vector.load %arg14[%c0_18, %c0_19] : memref<32x16xf32, #tpu.memory_space<vmem>>, vector<32x16xf32>
    tpu.vector_store %arg14[%c0_18, %c0_19], %22 {strides = array<i32>} : memref<32x16xf32, #tpu.memory_space<vmem>>, vector<32x16xf32>,
    %c0_20 = arith.constant 0 : index
    %c0_21 = arith.constant 0 : index
    %c0_22 = arith.constant 0 : index
    %24 = vector.load %arg5[%c0_20, %c0_21, %c0_22] : memref<2x16x8xf32, #tpu.memory_space<vmem>>, vector<1x16x8xf32>
    %25 = vector.shape_cast %24 : vector<1x16x8xf32> to vector<16x8xf32>
    %cst_23 = arith.constant dense<0.000000e+00> : vector<32x8xf32>
    %26 = tpu.matmul %1, %25, %cst_23 {dimension_numbers = #tpu.dot_dimension_numbers<[1], [0], [0], [1], [0, 0, 1, 1], [], []>} : vector<32x16xf32>, vector<16x8xf32>, vector<32x8xf32> -> vector<32x8xf32>
    %c0_24 = arith.constant 0 : index
    %c0_25 = arith.constant 0 : index
    %27 = vector.load %arg15[%c0_24, %c0_25] : memref<32x8xf32, #tpu.memory_space<vmem>>, vector<32x8xf32>
    tpu.vector_store %arg15[%c0_24, %c0_25], %26 {strides = array<i32>} : memref<32x8xf32, #tpu.memory_space<vmem>>, vector<32x8xf32>,
    %c0_26 = arith.constant 0 : index
    %c0_27 = arith.constant 0 : index
    %c0_28 = arith.constant 0 : index
    %28 = vector.load %arg6[%c0_26, %c0_27, %c0_28] : memref<2x16x8xf32, #tpu.memory_space<vmem>>, vector<1x16x8xf32>
    %29 = vector.shape_cast %28 : vector<1x16x8xf32> to vector<16x8xf32>
    %cst_29 = arith.constant dense<0.000000e+00> : vector<32x8xf32>
    %30 = tpu.matmul %1, %29, %cst_29 {dimension_numbers = #tpu.dot_dimension_numbers<[1], [0], [0], [1], [0, 0, 1, 1], [], []>} : vector<32x16xf32>, vector<16x8xf32>, vector<32x8xf32> -> vector<32x8xf32>
    %c0_30 = arith.constant 0 : index
    %c0_31 = arith.constant 0 : index
    %31 = vector.load %arg16[%c0_30, %c0_31] : memref<32x8xf32, #tpu.memory_space<vmem>>, vector<32x8xf32>
    tpu.vector_store %arg16[%c0_30, %c0_31], %30 {strides = array<i32>} : memref<32x8xf32, #tpu.memory_space<vmem>>, vector<32x8xf32>,
    %c0_32 = arith.constant 0 : index
    %c0_33 = arith.constant 0 : index
    %c0_34 = arith.constant 0 : index
    %32 = vector.load %arg7[%c0_32, %c0_33, %c0_34] : memref<2x16x8xf32, #tpu.memory_space<vmem>>, vector<1x16x8xf32>
    %33 = vector.shape_cast %32 : vector<1x16x8xf32> to vector<16x8xf32>
    %c0_35 = arith.constant 0 : index
    %c0_36 = arith.constant 0 : index
    %c0_37 = arith.constant 0 : index
    %34 = vector.load %arg8[%c0_35, %c0_36, %c0_37] : memref<2x1x16xf32, #tpu.memory_space<vmem>>, vector<1x1x16xf32>
    %35 = vector.shape_cast %34 : vector<1x1x16xf32> to vector<1x16xf32>
    %cst_38 = arith.constant 0.000000e+00 : f32
    %36 = vector.broadcast %cst_38 : f32 to vector<16x8xf32>
    %c0_39 = arith.constant 0 : index
    %c0_40 = arith.constant 0 : index
    %37 = vector.load %arg18[%c0_39, %c0_40] : memref<16x8xf32, #tpu.memory_space<vmem>>, vector<16x8xf32>
    tpu.vector_store %arg18[%c0_39, %c0_40], %36 {strides = array<i32>} : memref<16x8xf32, #tpu.memory_space<vmem>>, vector<16x8xf32>,
    %c0_i32 = arith.constant 0 : i32
    %c32_i32 = arith.constant 32 : i32
    %38 = arith.addi %c0_i32, %c32_i32 : i32
    %c1_i32 = arith.constant 1 : i32
    scf.for %arg20 = %c0_i32 to %38 step %c1_i32  : i32 {
      %105 = arith.index_cast %arg20 : i32 to index
      %c0_99 = arith.constant 0 : index
      %106 = vector.load %arg13[%105, %c0_99] : memref<32x16xf32, #tpu.memory_space<vmem>>, vector<1x16xf32>
      %107 = arith.index_cast %arg20 : i32 to index
      %c0_100 = arith.constant 0 : index
      %108 = vector.load %arg14[%107, %c0_100] : memref<32x16xf32, #tpu.memory_space<vmem>>, vector<1x16xf32>
      %109 = arith.index_cast %arg20 : i32 to index
      %c0_101 = arith.constant 0 : index
      %110 = vector.load %arg15[%109, %c0_101] : memref<32x8xf32, #tpu.memory_space<vmem>>, vector<1x8xf32>
      %111 = arith.index_cast %arg20 : i32 to index
      %c0_102 = arith.constant 0 : index
      %112 = vector.load %arg16[%111, %c0_102] : memref<32x8xf32, #tpu.memory_space<vmem>>, vector<1x8xf32>
      %113 = arith.index_cast %arg20 : i32 to index
      %c0_103 = arith.constant 0 : index
      %114 = vector.load %arg17[%113, %c0_103] : memref<32x16xf32, #tpu.memory_space<vmem>>, vector<1x16xf32>
      %cst_104 = arith.constant dense<0.000000e+00> : vector<16x8xf32>
      %115 = tpu.matmul %106, %3, %cst_104 {dimension_numbers = #tpu.dot_dimension_numbers<[0], [0], [1], [1], [0, 1, 1, 1], [], []>} : vector<1x16xf32>, vector<1x8xf32>, vector<16x8xf32> -> vector<16x8xf32>
      %116 = arith.mulf %115, %33 : vector<16x8xf32>
      %117 = math.exp %116 : vector<16x8xf32>
      %cst_105 = arith.constant dense<0.000000e+00> : vector<16x8xf32>
      %118 = tpu.matmul %108, %110, %cst_105 {dimension_numbers = #tpu.dot_dimension_numbers<[0], [0], [1], [1], [0, 1, 1, 1], [], []>} : vector<1x16xf32>, vector<1x8xf32>, vector<16x8xf32> -> vector<16x8xf32>
      %c0_106 = arith.constant 0 : index
      %c0_107 = arith.constant 0 : index
      %119 = vector.load %arg18[%c0_106, %c0_107] : memref<16x8xf32, #tpu.memory_space<vmem>>, vector<16x8xf32>
      %120 = arith.mulf %117, %119 : vector<16x8xf32>
      %121 = arith.addf %120, %118 : vector<16x8xf32>
      %c0_108 = arith.constant 0 : index
      %c0_109 = arith.constant 0 : index
      %122 = vector.load %arg18[%c0_108, %c0_109] : memref<16x8xf32, #tpu.memory_space<vmem>>, vector<16x8xf32>
      tpu.vector_store %arg18[%c0_108, %c0_109], %121 {strides = array<i32>} : memref<16x8xf32, #tpu.memory_space<vmem>>, vector<16x8xf32>,
      %cst_110 = arith.constant dense<0.000000e+00> : vector<1x16xf32>
      %123 = tpu.matmul %112, %121, %cst_110 {dimension_numbers = #tpu.dot_dimension_numbers<[1], [1], [0], [0], [0, 0, 1, 0], [], []>} : vector<1x8xf32>, vector<16x8xf32>, vector<1x16xf32> -> vector<1x16xf32>
      %124 = arith.mulf %35, %114 : vector<1x16xf32>
      %125 = arith.addf %123, %124 : vector<1x16xf32>
      %126 = arith.index_cast %arg20 : i32 to index
      %c0_111 = arith.constant 0 : index
      %127 = vector.load %arg19[%126, %c0_111] : memref<32x16xf32, #tpu.memory_space<vmem>>, vector<1x16xf32>
      %128 = arith.addf %127, %125 : vector<1x16xf32>
      %129 = arith.index_cast %arg20 : i32 to index
      %c0_112 = arith.constant 0 : index
      %130 = vector.load %arg19[%129, %c0_112] : memref<32x16xf32, #tpu.memory_space<vmem>>, vector<1x16xf32>
      tpu.vector_store %arg19[%129, %c0_112], %128 {strides = array<i32>} : memref<32x16xf32, #tpu.memory_space<vmem>>, vector<1x16xf32>,
    }
    %c32_i32_41 = arith.constant 32 : i32
    %c1 = arith.constant 1 : index
    %c0_42 = arith.constant 0 : index
    %c0_43 = arith.constant 0 : index
    %39 = vector.load %arg3[%c1, %c0_42, %c0_43] : memref<2x16x16xf32, #tpu.memory_space<vmem>>, vector<1x16x16xf32>
    %40 = vector.shape_cast %39 : vector<1x16x16xf32> to vector<16x16xf32>
    %cst_44 = arith.constant dense<0.000000e+00> : vector<32x16xf32>
    %41 = tpu.matmul %1, %40, %cst_44 {dimension_numbers = #tpu.dot_dimension_numbers<[1], [0], [0], [1], [0, 0, 1, 1], [], []>} : vector<32x16xf32>, vector<16x16xf32>, vector<32x16xf32> -> vector<32x16xf32>
    %c1_45 = arith.constant 1 : index
    %c0_46 = arith.constant 0 : index
    %c0_47 = arith.constant 0 : index
    %42 = vector.load %arg4[%c1_45, %c0_46, %c0_47] : memref<2x1x16xf32, #tpu.memory_space<vmem>>, vector<1x1x16xf32>
    %43 = vector.shape_cast %42 : vector<1x1x16xf32> to vector<1x16xf32>
    %44 = vector.broadcast %43 : vector<1x16xf32> to vector<32x16xf32>
    %45 = arith.addf %41, %44 : vector<32x16xf32>
    %cst_48 = arith.constant 0.000000e+00 : f32
    %46 = vector.broadcast %cst_48 : f32 to vector<32x16xf32>
    %47 = arith.maximumf %45, %46 : vector<32x16xf32>
    %48 = math.absf %45 : vector<32x16xf32>
    %cst_49 = arith.constant 0.000000e+00 : f32
    %49 = vector.broadcast %cst_49 : f32 to vector<32x16xf32>
    %50 = arith.subf %49, %48 : vector<32x16xf32>
    %51 = math.exp %50 : vector<32x16xf32>
    %52 = math.log1p %51 : vector<32x16xf32>
    %53 = arith.addf %47, %52 : vector<32x16xf32>
    %c0_50 = arith.constant 0 : index
    %c0_51 = arith.constant 0 : index
    %54 = vector.load %arg13[%c0_50, %c0_51] : memref<32x16xf32, #tpu.memory_space<vmem>>, vector<32x16xf32>
    tpu.vector_store %arg13[%c0_50, %c0_51], %53 {strides = array<i32>} : memref<32x16xf32, #tpu.memory_space<vmem>>, vector<32x16xf32>,
    %55 = arith.mulf %53, %1 : vector<32x16xf32>
    %c0_52 = arith.constant 0 : index
    %c0_53 = arith.constant 0 : index
    %56 = vector.load %arg14[%c0_52, %c0_53] : memref<32x16xf32, #tpu.memory_space<vmem>>, vector<32x16xf32>
    tpu.vector_store %arg14[%c0_52, %c0_53], %55 {strides = array<i32>} : memref<32x16xf32, #tpu.memory_space<vmem>>, vector<32x16xf32>,
    %c1_54 = arith.constant 1 : index
    %c0_55 = arith.constant 0 : index
    %c0_56 = arith.constant 0 : index
    %57 = vector.load %arg5[%c1_54, %c0_55, %c0_56] : memref<2x16x8xf32, #tpu.memory_space<vmem>>, vector<1x16x8xf32>
    %58 = vector.shape_cast %57 : vector<1x16x8xf32> to vector<16x8xf32>
    %cst_57 = arith.constant dense<0.000000e+00> : vector<32x8xf32>
    %59 = tpu.matmul %1, %58, %cst_57 {dimension_numbers = #tpu.dot_dimension_numbers<[1], [0], [0], [1], [0, 0, 1, 1], [], []>} : vector<32x16xf32>, vector<16x8xf32>, vector<32x8xf32> -> vector<32x8xf32>
    %c0_58 = arith.constant 0 : index
    %c0_59 = arith.constant 0 : index
    %60 = vector.load %arg15[%c0_58, %c0_59] : memref<32x8xf32, #tpu.memory_space<vmem>>, vector<32x8xf32>
    tpu.vector_store %arg15[%c0_58, %c0_59], %59 {strides = array<i32>} : memref<32x8xf32, #tpu.memory_space<vmem>>, vector<32x8xf32>,
    %c1_60 = arith.constant 1 : index
    %c0_61 = arith.constant 0 : index
    %c0_62 = arith.constant 0 : index
    %61 = vector.load %arg6[%c1_60, %c0_61, %c0_62] : memref<2x16x8xf32, #tpu.memory_space<vmem>>, vector<1x16x8xf32>
    %62 = vector.shape_cast %61 : vector<1x16x8xf32> to vector<16x8xf32>
    %cst_63 = arith.constant dense<0.000000e+00> : vector<32x8xf32>
    %63 = tpu.matmul %1, %62, %cst_63 {dimension_numbers = #tpu.dot_dimension_numbers<[1], [0], [0], [1], [0, 0, 1, 1], [], []>} : vector<32x16xf32>, vector<16x8xf32>, vector<32x8xf32> -> vector<32x8xf32>
    %c0_64 = arith.constant 0 : index
    %c0_65 = arith.constant 0 : index
    %64 = vector.load %arg16[%c0_64, %c0_65] : memref<32x8xf32, #tpu.memory_space<vmem>>, vector<32x8xf32>
    tpu.vector_store %arg16[%c0_64, %c0_65], %63 {strides = array<i32>} : memref<32x8xf32, #tpu.memory_space<vmem>>, vector<32x8xf32>,
    %c1_66 = arith.constant 1 : index
    %c0_67 = arith.constant 0 : index
    %c0_68 = arith.constant 0 : index
    %65 = vector.load %arg7[%c1_66, %c0_67, %c0_68] : memref<2x16x8xf32, #tpu.memory_space<vmem>>, vector<1x16x8xf32>
    %66 = vector.shape_cast %65 : vector<1x16x8xf32> to vector<16x8xf32>
    %c1_69 = arith.constant 1 : index
    %c0_70 = arith.constant 0 : index
    %c0_71 = arith.constant 0 : index
    %67 = vector.load %arg8[%c1_69, %c0_70, %c0_71] : memref<2x1x16xf32, #tpu.memory_space<vmem>>, vector<1x1x16xf32>
    %68 = vector.shape_cast %67 : vector<1x1x16xf32> to vector<1x16xf32>
    %cst_72 = arith.constant 0.000000e+00 : f32
    %69 = vector.broadcast %cst_72 : f32 to vector<16x8xf32>
    %c0_73 = arith.constant 0 : index
    %c0_74 = arith.constant 0 : index
    %70 = vector.load %arg18[%c0_73, %c0_74] : memref<16x8xf32, #tpu.memory_space<vmem>>, vector<16x8xf32>
    tpu.vector_store %arg18[%c0_73, %c0_74], %69 {strides = array<i32>} : memref<16x8xf32, #tpu.memory_space<vmem>>, vector<16x8xf32>,
    %c0_i32_75 = arith.constant 0 : i32
    %c32_i32_76 = arith.constant 32 : i32
    %71 = arith.addi %c0_i32_75, %c32_i32_76 : i32
    %c1_i32_77 = arith.constant 1 : i32
    scf.for %arg20 = %c0_i32_75 to %71 step %c1_i32_77  : i32 {
      %105 = arith.index_cast %arg20 : i32 to index
      %c0_99 = arith.constant 0 : index
      %106 = vector.load %arg13[%105, %c0_99] : memref<32x16xf32, #tpu.memory_space<vmem>>, vector<1x16xf32>
      %107 = arith.index_cast %arg20 : i32 to index
      %c0_100 = arith.constant 0 : index
      %108 = vector.load %arg14[%107, %c0_100] : memref<32x16xf32, #tpu.memory_space<vmem>>, vector<1x16xf32>
      %109 = arith.index_cast %arg20 : i32 to index
      %c0_101 = arith.constant 0 : index
      %110 = vector.load %arg15[%109, %c0_101] : memref<32x8xf32, #tpu.memory_space<vmem>>, vector<1x8xf32>
      %111 = arith.index_cast %arg20 : i32 to index
      %c0_102 = arith.constant 0 : index
      %112 = vector.load %arg16[%111, %c0_102] : memref<32x8xf32, #tpu.memory_space<vmem>>, vector<1x8xf32>
      %113 = arith.index_cast %arg20 : i32 to index
      %c0_103 = arith.constant 0 : index
      %114 = vector.load %arg17[%113, %c0_103] : memref<32x16xf32, #tpu.memory_space<vmem>>, vector<1x16xf32>
      %cst_104 = arith.constant dense<0.000000e+00> : vector<16x8xf32>
      %115 = tpu.matmul %106, %3, %cst_104 {dimension_numbers = #tpu.dot_dimension_numbers<[0], [0], [1], [1], [0, 1, 1, 1], [], []>} : vector<1x16xf32>, vector<1x8xf32>, vector<16x8xf32> -> vector<16x8xf32>
      %116 = arith.mulf %115, %66 : vector<16x8xf32>
      %117 = math.exp %116 : vector<16x8xf32>
      %cst_105 = arith.constant dense<0.000000e+00> : vector<16x8xf32>
      %118 = tpu.matmul %108, %110, %cst_105 {dimension_numbers = #tpu.dot_dimension_numbers<[0], [0], [1], [1], [0, 1, 1, 1], [], []>} : vector<1x16xf32>, vector<1x8xf32>, vector<16x8xf32> -> vector<16x8xf32>
      %c0_106 = arith.constant 0 : index
      %c0_107 = arith.constant 0 : index
      %119 = vector.load %arg18[%c0_106, %c0_107] : memref<16x8xf32, #tpu.memory_space<vmem>>, vector<16x8xf32>
      %120 = arith.mulf %117, %119 : vector<16x8xf32>
      %121 = arith.addf %120, %118 : vector<16x8xf32>
      %c0_108 = arith.constant 0 : index
      %c0_109 = arith.constant 0 : index
      %122 = vector.load %arg18[%c0_108, %c0_109] : memref<16x8xf32, #tpu.memory_space<vmem>>, vector<16x8xf32>
      tpu.vector_store %arg18[%c0_108, %c0_109], %121 {strides = array<i32>} : memref<16x8xf32, #tpu.memory_space<vmem>>, vector<16x8xf32>,
      %cst_110 = arith.constant dense<0.000000e+00> : vector<1x16xf32>
      %123 = tpu.matmul %112, %121, %cst_110 {dimension_numbers = #tpu.dot_dimension_numbers<[1], [1], [0], [0], [0, 0, 1, 0], [], []>} : vector<1x8xf32>, vector<16x8xf32>, vector<1x16xf32> -> vector<1x16xf32>
      %124 = arith.mulf %68, %114 : vector<1x16xf32>
      %125 = arith.addf %123, %124 : vector<1x16xf32>
      %c31_i32 = arith.constant 31 : i32
      %126 = arith.subi %c31_i32, %arg20 : i32
      %127 = arith.index_cast %126 : i32 to index
      %c0_111 = arith.constant 0 : index
      %128 = vector.load %arg19[%127, %c0_111] : memref<32x16xf32, #tpu.memory_space<vmem>>, vector<1x16xf32>
      %129 = arith.addf %128, %125 : vector<1x16xf32>
      %130 = arith.index_cast %126 : i32 to index
      %c0_112 = arith.constant 0 : index
      %131 = vector.load %arg19[%130, %c0_112] : memref<32x16xf32, #tpu.memory_space<vmem>>, vector<1x16xf32>
      tpu.vector_store %arg19[%130, %c0_112], %129 {strides = array<i32>} : memref<32x16xf32, #tpu.memory_space<vmem>>, vector<1x16xf32>,
    }
    %c32_i32_78 = arith.constant 32 : i32
    %c0_79 = arith.constant 0 : index
    %c0_80 = arith.constant 0 : index
    %72 = vector.load %arg19[%c0_79, %c0_80] : memref<32x16xf32, #tpu.memory_space<vmem>>, vector<32x16xf32>
    %cst_81 = arith.constant dense<0.000000e+00> : vector<32xf32>
    %73 = vector.multi_reduction <add>, %72, %cst_81 [1] : vector<32x16xf32> to vector<32xf32>
    %74 = vector.shape_cast %73 : vector<32xf32> to vector<32x1xf32>
    %cst_82 = arith.constant 1.600000e+01 : f32
    %75 = vector.broadcast %cst_82 : f32 to vector<32x1xf32>
    %76 = arith.divf %74, %75 : vector<32x1xf32>
    %77 = vector.broadcast %76 : vector<32x1xf32> to vector<32x16xf32>
    %78 = arith.subf %72, %77 : vector<32x16xf32>
    %79 = arith.mulf %78, %78 : vector<32x16xf32>
    %cst_83 = arith.constant dense<0.000000e+00> : vector<32xf32>
    %80 = vector.multi_reduction <add>, %79, %cst_83 [1] : vector<32x16xf32> to vector<32xf32>
    %81 = vector.shape_cast %80 : vector<32xf32> to vector<32x1xf32>
    %cst_84 = arith.constant 1.600000e+01 : f32
    %82 = vector.broadcast %cst_84 : f32 to vector<32x1xf32>
    %83 = arith.divf %81, %82 : vector<32x1xf32>
    %84 = vector.broadcast %76 : vector<32x1xf32> to vector<32x16xf32>
    %85 = arith.subf %72, %84 : vector<32x16xf32>
    %cst_85 = arith.constant 9.99999974E-6 : f32
    %86 = vector.broadcast %cst_85 : f32 to vector<32x1xf32>
    %87 = arith.addf %83, %86 : vector<32x1xf32>
    %88 = math.rsqrt %87 : vector<32x1xf32>
    %89 = vector.broadcast %88 : vector<32x1xf32> to vector<32x16xf32>
    %90 = arith.mulf %85, %89 : vector<32x16xf32>
    %c0_86 = arith.constant 0 : index
    %c0_87 = arith.constant 0 : index
    %91 = vector.load %arg9[%c0_86, %c0_87] : memref<1x16xf32, #tpu.memory_space<vmem>>, vector<1x16xf32>
    %92 = vector.broadcast %91 : vector<1x16xf32> to vector<32x16xf32>
    %93 = arith.mulf %90, %92 : vector<32x16xf32>
    %c0_88 = arith.constant 0 : index
    %c0_89 = arith.constant 0 : index
    %94 = vector.load %arg10[%c0_88, %c0_89] : memref<1x16xf32, #tpu.memory_space<vmem>>, vector<1x16xf32>
    %95 = vector.broadcast %94 : vector<1x16xf32> to vector<32x16xf32>
    %96 = arith.addf %93, %95 : vector<32x16xf32>
    %c0_90 = arith.constant 0 : index
    %c0_91 = arith.constant 0 : index
    %c0_92 = arith.constant 0 : index
    %97 = vector.load %arg2[%c0_90, %c0_91, %c0_92] : memref<1x32x16xf32, #tpu.memory_space<vmem>>, vector<1x32x16xf32>
    %98 = vector.shape_cast %97 : vector<1x32x16xf32> to vector<32x16xf32>
    %99 = arith.mulf %96, %98 : vector<32x16xf32>
    %c0_93 = arith.constant 0 : index
    %c0_94 = arith.constant 0 : index
    %100 = vector.load %arg11[%c0_93, %c0_94] : memref<32x16xf32, #tpu.memory_space<vmem>>, vector<32x16xf32>
    %cst_95 = arith.constant dense<0.000000e+00> : vector<16x16xf32>
    %101 = tpu.matmul %99, %100, %cst_95 {dimension_numbers = #tpu.dot_dimension_numbers<[0], [0], [1], [1], [0, 1, 1, 1], [], []>} : vector<32x16xf32>, vector<32x16xf32>, vector<16x16xf32> -> vector<16x16xf32>
    %c0_96 = arith.constant 0 : index
    %c0_97 = arith.constant 0 : index
    %c0_98 = arith.constant 0 : index
    %102 = vector.load %arg12[%c0_96, %c0_97, %c0_98] : memref<1x16x16xf32, #tpu.memory_space<vmem>>, vector<1x16x16xf32>
    %103 = vector.shape_cast %102 : vector<1x16x16xf32> to vector<16x16xf32>
    %104 = vector.shape_cast %101 : vector<16x16xf32> to vector<1x16x16xf32>
    tpu.vector_store %arg12[%c0_96, %c0_97, %c0_98], %104 {strides = array<i32>} : memref<1x16x16xf32, #tpu.memory_space<vmem>>, vector<1x16x16xf32>,
    return
  }
  func.func @transform_0(%arg0: i32) -> (i32, i32, i32) {
    %c0_i32 = arith.constant 0 : i32
    %c0_i32_0 = arith.constant 0 : i32
    %c0_i32_1 = arith.constant 0 : i32
    return %arg0, %c0_i32, %c0_i32_0 : i32, i32, i32
  }
  func.func @transform_1(%arg0: i32) -> (i32, i32, i32) {
    %c0_i32 = arith.constant 0 : i32
    %c0_i32_0 = arith.constant 0 : i32
    %c0_i32_1 = arith.constant 0 : i32
    return %arg0, %c0_i32, %c0_i32_0 : i32, i32, i32
  }
  func.func @transform_2(%arg0: i32) -> (i32, i32, i32) {
    %c0_i32 = arith.constant 0 : i32
    %c0_i32_0 = arith.constant 0 : i32
    %c0_i32_1 = arith.constant 0 : i32
    %c0_i32_2 = arith.constant 0 : i32
    return %c0_i32, %c0_i32_0, %c0_i32_1 : i32, i32, i32
  }
  func.func @transform_3(%arg0: i32) -> (i32, i32, i32) {
    %c0_i32 = arith.constant 0 : i32
    %c0_i32_0 = arith.constant 0 : i32
    %c0_i32_1 = arith.constant 0 : i32
    %c0_i32_2 = arith.constant 0 : i32
    return %c0_i32, %c0_i32_0, %c0_i32_1 : i32, i32, i32
  }
  func.func @transform_4(%arg0: i32) -> (i32, i32, i32) {
    %c0_i32 = arith.constant 0 : i32
    %c0_i32_0 = arith.constant 0 : i32
    %c0_i32_1 = arith.constant 0 : i32
    %c0_i32_2 = arith.constant 0 : i32
    return %c0_i32, %c0_i32_0, %c0_i32_1 : i32, i32, i32
  }
  func.func @transform_5(%arg0: i32) -> (i32, i32, i32) {
    %c0_i32 = arith.constant 0 : i32
    %c0_i32_0 = arith.constant 0 : i32
    %c0_i32_1 = arith.constant 0 : i32
    %c0_i32_2 = arith.constant 0 : i32
    return %c0_i32, %c0_i32_0, %c0_i32_1 : i32, i32, i32
  }
  func.func @transform_6(%arg0: i32) -> (i32, i32, i32) {
    %c0_i32 = arith.constant 0 : i32
    %c0_i32_0 = arith.constant 0 : i32
    %c0_i32_1 = arith.constant 0 : i32
    %c0_i32_2 = arith.constant 0 : i32
    return %c0_i32, %c0_i32_0, %c0_i32_1 : i32, i32, i32
  }
  func.func @transform_7(%arg0: i32) -> (i32, i32, i32) {
    %c0_i32 = arith.constant 0 : i32
    %c0_i32_0 = arith.constant 0 : i32
    %c0_i32_1 = arith.constant 0 : i32
    %c0_i32_2 = arith.constant 0 : i32
    return %c0_i32, %c0_i32_0, %c0_i32_1 : i32, i32, i32
  }
  func.func @transform_8(%arg0: i32) -> (i32, i32) {
    %c0_i32 = arith.constant 0 : i32
    %c0_i32_0 = arith.constant 0 : i32
    %c0_i32_1 = arith.constant 0 : i32
    return %c0_i32, %c0_i32_0 : i32, i32
  }
  func.func @transform_9(%arg0: i32) -> (i32, i32) {
    %c0_i32 = arith.constant 0 : i32
    %c0_i32_0 = arith.constant 0 : i32
    %c0_i32_1 = arith.constant 0 : i32
    return %c0_i32, %c0_i32_0 : i32, i32
  }
  func.func @transform_10(%arg0: i32) -> (i32, i32) {
    %c0_i32 = arith.constant 0 : i32
    %c0_i32_0 = arith.constant 0 : i32
    %c0_i32_1 = arith.constant 0 : i32
    return %c0_i32, %c0_i32_0 : i32, i32
  }
  func.func @transform_11(%arg0: i32) -> (i32, i32, i32) {
    %c0_i32 = arith.constant 0 : i32
    %c0_i32_0 = arith.constant 0 : i32
    %c0_i32_1 = arith.constant 0 : i32
    return %arg0, %c0_i32, %c0_i32_0 : i32, i32, i32
  }
}

</mosaic_0001>

<bundles_post_ra>
// kernel: bss_forward.4
= control target key start
LH: loop header
LB: loop body
LE: loop exit
PB: predicated region body
PF: predicated region fallthrough
CT: control target
= control target key end

     0   :  { %s577_s12 = smov 0   ;;  %s690_s0 = inlined_call_operand.vmem [shape: f32[2,6,6,32], index: 0, kind: input, shape index: {}]   ;;  %s691_s1 = inlined_call_operand.vmem [shape: f32[9,1,32], index: 1, kind: input, shape index: {}]   ;;  %s692_s2 = inlined_call_operand.vmem [shape: f32[1,32], index: 2, kind: input, shape index: {}]   ;;  %s693_s3 = inlined_call_operand.vmem [shape: f32[2,4,4,32], index: 3, kind: output, shape index: {}]  }
   0x1 LB: > { %s491_s13 = sadd.s32 4294967295, %s555_s12   ;;  %p495_p0 = scmp.ge.s32.totalorder %s555_s12, 1  ;;  %s555_s12 = sphi %s577_s12, %s13_s12  }
   0x2   : > { %p137_p1 = scmp.lt.s32.totalorder %s555_s12, 3 }
   0x4   : > { %p138_p2 = pnand %p495_p0, %p137_p1 }
   0x5   : > { %p161_p3 = scmp.lt.s32.totalorder (!%p138_p2), %s491_s13, 1 }
   0x6   : > { %141 = sbr.rel (%p138_p2) target bundleno = 85 (0x55), region = 32 }
   0xb   : > { %s695_s13 = smov (!%p161_p3, %s491_s13), 1  ;;  %v591_v0 = vld [vmem:[%s691_s1] ss:$0 sm:$0xff]  ;;  %v596_v1 = vld [vmem:[%s691_s1 + $0x1] ss:$0 sm:$0xff]  ;;  %vm431_vm0 = vcmask 257024  }
   0xc   : > { %s524_s14 = smul.u32 48, %s695_s13  ;;  %v601_v2 = vld [vmem:[%s691_s1 + $0x2] ss:$0 sm:$0xff]  ;;  %v611_v3 = vld [vmem:[%s691_s1 + $0x4] ss:$0 sm:$0xff]  ;;  %s523_s11 = sshll.u32 %s695_s13, 4 }
   0xd   : > { %v617_v5 = vld [vmem:[%s691_s1 + $0x5] ss:$0 sm:$0xff]  ;;  %v622_v6 = vld [vmem:[%s691_s1 + $0x7] ss:$0 sm:$0xff]  ;;  %v632_v12 = vld [vmem:[%s691_s1 + $0x3] ss:$0 sm:$0xff]  ;;  %s170_s16 = scalar_lea.vmem %s693_s3, %s523_s11 }
   0xe   : > { %s606_s23 = scalar_lea.vmem %s690_s0, %s524_s14  ;;  %v638_v14 = vld [vmem:[%s691_s1 + $0x8] ss:$0 sm:$0xff]  ;;  %v644_v18 = vld [vmem:[%s691_s1 + $0x6] ss:$0 sm:$0xff] }
   0xf   : > { %v171_v4 = vld [vmem:[%s606_s23] sm:$0x3f]  ;;  %v172_v7 = vld [vmem:[%s606_s23 + $0x8] sm:$0x3f]  ;;  %v173_v11 = vld [vmem:[%s606_s23 + $0x10] sm:$0x3f] }
  0x10   : > { %v184_v8 = vmul.f32 %v591_v0, %v171_v4  ;;  %v200_v9 = vmul.f32 %v596_v1, %v171_v4  ;;  %v228_v10 = vmul.f32 %v601_v2, %v171_v4  ;;  %v272_v13 = vmul.f32 %v611_v3, %v172_v7  ;;  %v174_v30 = vld [vmem:[%s606_s23 + $0x18] sm:$0x3f]  ;;  %v175_v55 = vld [vmem:[%s606_s23 + $0x20] sm:$0x3f] }
  0x11   : > { %v300_v17 = vmul.f32 %v617_v5, %v172_v7  ;;  %v344_v19 = vmul.f32 %v622_v6, %v173_v11  ;;  %v185_v20 = vmul.f32 %v591_v0, %v172_v7  ;;  %v201_v21 = vmul.f32 %v596_v1, %v172_v7 }
  0x12   : > { %v208_v15 = vrot.slane %v200_v9, 1  ;;  %v236_v16 = vrot.slane %v228_v10, 2  ;;  %v256_v23 = vmul.f32 %v632_v12, %v172_v7  ;;  %v372_v24 = vmul.f32 %v638_v14, %v173_v11 }
  0x13   : > { %v229_v25 = vmul.f32 %v601_v2, %v172_v7  ;;  %v280_v26 = vrot.slane %v272_v13, 1  ;;  %v328_v27 = vmul.f32 %v644_v18, %v173_v11  ;;  %v209_v28 = vrot.slane %v201_v21, 1 }
  0x14   : > { %v216_v22 = vadd.f32 %v208_v15, %v184_v8  ;;  %v273_v29 = vmul.f32 %v611_v3, %v173_v11  ;;  %v308_v32 = vrot.slane %v300_v17, 2  ;;  %v352_v33 = vrot.slane %v344_v19, 1 }
  0x15   : > { %v237_v34 = vrot.slane %v229_v25, 2  ;;  %v217_v35 = vadd.f32 %v209_v28, %v185_v20  ;;  %v257_v36 = vmul.f32 %v632_v12, %v173_v11  ;;  %v301_v37 = vmul.f32 %v617_v5, %v173_v11 }
  0x16   : > { %v244_v31 = vadd.f32 %v236_v16, %v216_v22  ;;  %v345_v38 = vmul.f32 %v622_v6, %v174_v30  ;;  %v380_v40 = vrot.slane %v372_v24, 2  ;;  %v186_v41 = vmul.f32 %v591_v0, %v173_v11 }
  0x17   : > { %v202_v42 = vmul.f32 %v596_v1, %v173_v11  ;;  %v245_v43 = vadd.f32 %v237_v34, %v217_v35  ;;  %v281_v44 = vrot.slane %v273_v29, 1  ;;  %v373_v45 = vmul.f32 %v638_v14, %v174_v30 }
  0x18   : > { %v260_v39 = vadd.f32 %v256_v23, %v244_v31  ;;  %v230_v46 = vmul.f32 %v601_v2, %v173_v11  ;;  %v329_v48 = vmul.f32 %v644_v18, %v174_v30  ;;  %v274_v50 = vmul.f32 %v611_v3, %v174_v30 }
  0x19   : > { %v210_v49 = vrot.slane %v202_v42, 1  ;;  %v261_v51 = vadd.f32 %v257_v36, %v245_v43  ;;  %v309_v52 = vrot.slane %v301_v37, 2  ;;  %v353_v53 = vrot.slane %v345_v38, 1 }
  0x1a   : > { %v288_v47 = vadd.f32 %v280_v26, %v260_v39  ;;  %v238_v54 = vrot.slane %v230_v46, 2  ;;  %v258_v58 = vmul.f32 %v632_v12, %v174_v30  ;;  %v302_v59 = vmul.f32 %v617_v5, %v174_v30  ;;  %v176_v26 = vld [vmem:[%s606_s23 + $0x28] sm:$0x3f] }
  0x1b   : > { %v218_v57 = vadd.f32 %v210_v49, %v186_v41  ;;  %v289_v60 = vadd.f32 %v281_v44, %v261_v51  ;;  %v381_v61 = vrot.slane %v373_v45, 2  ;;  %v187_v62 = vmul.f32 %v591_v0, %v174_v30  ;;  %v516_v0 = vld [vmem:[%s692_s2] ss:$0 sm:$0xff] }
  0x1c   : > { %v316_v56 = vadd.f32 %v308_v32, %v288_v47  ;;  %v203_v63 = vmul.f32 %v596_v1, %v174_v30  ;;  %v282_v8 = vrot.slane %v274_v50, 1  ;;  %v231_v9 = vmul.f32 %v601_v2, %v174_v30 }
  0x1d   : > { %v246_v7 = vadd.f32 %v238_v54, %v218_v57  ;;  %v317_v10 = vadd.f32 %v309_v52, %v289_v60  ;;  %v346_v11 = vmul.f32 %v622_v6, %v175_v55  ;;  %v275_v15 = vmul.f32 %v611_v3, %v175_v55 }
  0x1e   : > { %v332_v4 = vadd.f32 %v328_v27, %v316_v56  ;;  %v211_v13 = vrot.slane %v203_v63, 1  ;;  %v310_v19 = vrot.slane %v302_v59, 2  ;;  %v239_v20 = vrot.slane %v231_v9, 2 }
  0x1f   : > { %v262_v17 = vadd.f32 %v258_v58, %v246_v7  ;;  %v333_v1 = vadd.f32 %v329_v48, %v317_v10  ;;  %v259_v22 = vmul.f32 %v632_v12, %v175_v55  ;;  %v303_v2 = vmul.f32 %v617_v5, %v175_v55 }
  0x20   : > { %v360_v16 = vadd.f32 %v352_v33, %v332_v4  ;;  %v219_v21 = vadd.f32 %v211_v13, %v187_v62  ;;  %v330_v25 = vmul.f32 %v644_v18, %v175_v55  ;;  %v374_v3 = vmul.f32 %v638_v14, %v175_v55 }
  0x21   : > { %v290_v24 = vadd.f32 %v282_v8, %v262_v17  ;;  %v361_v27 = vadd.f32 %v353_v53, %v333_v1  ;;  %v283_v29 = vrot.slane %v275_v15, 1  ;;  %v354_v32 = vrot.slane %v346_v11, 1 }
  0x22   : > { %v388_v23 = vadd.f32 %v380_v40, %v360_v16  ;;  %v247_v28 = vadd.f32 %v239_v20, %v219_v21  ;;  %v311_v35 = vrot.slane %v303_v2, 2  ;;  %v347_v12 = vmul.f32 %v622_v6, %v176_v26 }
  0x23   : > { %v318_v31 = vadd.f32 %v310_v19, %v290_v24  ;;  %v389_v33 = vadd.f32 %v381_v61, %v361_v27  ;;  %v382_v37 = vrot.slane %v374_v3, 2  ;;  %v331_v40 = vmul.f32 %v644_v18, %v176_v26 }
  0x24   : > { %v399_v30 = vadd.f32 %v516_v0, %v388_v23  ;;  %v263_v34 = vadd.f32 %v259_v22, %v247_v28  ;;  %v375_v41 = vmul.f32 %v638_v14, %v176_v26  ;;  %v355_v45 = vrot.slane %v347_v12, 1 }
  0x25   : > { %v334_v5 = vadd.f32 %v330_v25, %v318_v31  ;;  %v400_v38 = vadd.f32 %v516_v0, %v389_v33 }
  0x26   : > { %v517_v36 = vmul.f32 -1.442695, %v399_v30  ;;  %v291_v39 = vadd.f32 %v283_v29, %v263_v34  ;;  %v383_v48 = vrot.slane %v375_v41, 2 }
  0x27   : > { %v362_v42 = vadd.f32 %v354_v32, %v334_v5  ;;  %v518_v43 = vmul.f32 -1.442695, %v400_v38 }
  0x28   : > { %533 = vpow2.f32 %v517_v36  ;;  %v319_v44 = vadd.f32 %v311_v35, %v291_v39 }
  0x29   : > { %v390_v46 = vadd.f32 %v382_v37, %v362_v42  ;;  %535 = vpow2.f32 %v518_v43 }
  0x2a   : > { %v335_v47 = vadd.f32 %v331_v40, %v319_v44 }
  0x2b   : > { %v401_v49 = vadd.f32 %v516_v0, %v390_v46 }
  0x2c   : > { %v363_v6 = vadd.f32 %v355_v45, %v335_v47 }
  0x2d   : > { %v519_v50 = vmul.f32 -1.442695, %v401_v49 }
  0x2e   : > { %v391_v51 = vadd.f32 %v383_v48, %v363_v6 }
  0x2f   : > { %537 = vpow2.f32 %v519_v50 }
  0x30   : > { %v402_v52 = vadd.f32 %v516_v0, %v391_v51 }
  0x32   : > { %v520_v53 = vmul.f32 -1.442695, %v402_v52 }
  0x34   : > { %539 = vpow2.f32 %v520_v53 }
  0x35   : > { %v534_v18 = vpop.eup %533 }
  0x36   : > { %v415_v14 = vadd.f32 1.0, %v534_v18  ;;  %v536_v54 = vpop.eup %535 }
  0x37   : > { %v416_v55 = vadd.f32 1.0, %v536_v54 }
  0x38   : > { %541 = vrcp.f32 %v415_v14 }
  0x39   : > { %543 = vrcp.f32 %v416_v55 }
  0x3c   : > { %v538_v56 = vpop.eup %537 }
  0x3d   : > { %v417_v57 = vadd.f32 1.0, %v538_v56 }
  0x3f   : > { %545 = vrcp.f32 %v417_v57 }
  0x41   : > { %v540_v58 = vpop.eup %539 }
  0x42   : > { %v418_v59 = vadd.f32 1.0, %v540_v58 }
  0x44   : > { %547 = vrcp.f32 %v418_v59 }
  0x45   : > { %v542_v60 = vpop.eup %541 }
  0x46   : > { %v427_v61 = vmul.f32 %v542_v60, %v399_v30  ;;  %v544_v62 = vpop.eup %543 }
  0x47   : > { %v428_v63 = vmul.f32 %v544_v62, %v400_v38 }
  0x48   : > { %432 = vst.msk [vmem:[%s170_s16] sm:$0xf] %vm431_vm0, %v427_v61 }
  0x49   : > { %433 = vst.msk [vmem:[%s170_s16 + $0x4] sm:$0xf] %vm431_vm0, %v428_v63 }
  0x4c   : > { %v546_v4 = vpop.eup %545 }
  0x4d   : > { %v429_v7 = vmul.f32 %v546_v4, %v401_v49 }
  0x4f   : > { %434 = vst.msk [vmem:[%s170_s16 + $0x8] sm:$0xf] %vm431_vm0, %v429_v7 }
  0x51   : > { %v548_v8 = vpop.eup %547 }
  0x52   : > { %v430_v9 = vmul.f32 %v548_v8, %v402_v52 }
  0x54   : > { %435 = vst.msk [vmem:[%s170_s16 + $0xc] sm:$0xf] %vm431_vm0, %v430_v9 }
  0x55 PF: > { %s13_s12 = sadd.s32 1, %s555_s12  }
  0x56   : > { %p10_p4 = scmp.ge.s32.totalorder %s13_s12, 4  }
  0x58   :  { %12 = sbr.rel (!%p10_p4) target bundleno = 1 (0x1), region = 70 }

// kernel: bss_forward.3
= control target key start
LH: loop header
LB: loop body
LE: loop exit
PB: predicated region body
PF: predicated region fallthrough
CT: control target
= control target key end

     0   :  { %10 = vsyncpa [#allocation3], 0  ;;  %s451_s0 = inlined_call_operand.hbm [shape: f32[32,16], index: 0, kind: input, shape index: {}]   ;;  %s452_s1 = inlined_call_operand.vmem [shape: f32[16,32], index: 1, kind: input, shape index: {}]   ;;  %s453_s2 = inlined_call_operand.hbm [shape: f32[16,32], index: 2, kind: input, shape index: {}]   ;;  %s454_s3 = inlined_call_operand.vmem [shape: f32[32,32], index: 3, kind: output, shape index: {0}]   ;;  %s455_s4 = inlined_call_operand.vmem [shape: f32[32,32], index: 4, kind: output, shape index: {1}]  }
   0x1   :  { %11 = vsyncpa [#allocation5], 0  ;;  %s370_s15 = smov [#allocation2]  }
   0x2   :  { %s17_s16 = sshll.u32 %s370_s15, 4  ;;  %s18_s16 = int_to_ptr.vmem [resolvable:$true] %s17_s16 }
   0x3   :  { %s334_s17 = scalar_lea.vmem %s18_s16, 512  ;;  %p339_p1 = scmp.lt.s32.totalorder %s18_s16, %s18_s16 }
   0x4   :  { %p335_p0 = scmp.ne.s32.totalorder %s18_s16, %s334_s17  ;;  %p340_p2 = scmp.lt.s32.totalorder %s334_s17, %s334_s17 }
   0x6   :  { %p341_p3 = por %p340_p2, %p339_p1 }
   0x8   :  { %p342_p4 = pnand %p341_p3, %p335_p0 }
   0xa   :  { %345 = shalt.err (!%p342_p4)
}
   0xb   :  { %s371_s18 = smov 128   ;;  %s372_s19 = smov 8  }
   0xc   :  { %23 = dma.hbm_to_vmem [thread:$0]  %s451_s0, 512, %s18_s16, [#allocation3], %s371_s18, %s371_s18, %s372_s19  }
   0xd   :  { %s373_s22 = smov [#allocation4]  }
   0xe   :  { %s31_s23 = sshll.u32 %s373_s22, 4  ;;  %s32_s23 = int_to_ptr.vmem [resolvable:$true] %s31_s23 }
   0xf   :  { %s354_s24 = scalar_lea.vmem %s32_s23, 256  ;;  %p359_p6 = scmp.lt.s32.totalorder %s32_s23, %s32_s23 }
  0x10   :  { %p355_p5 = scmp.ne.s32.totalorder %s32_s23, %s354_s24  ;;  %p360_p7 = scmp.lt.s32.totalorder %s354_s24, %s354_s24 }
  0x12   :  { %p361_p8 = por %p360_p7, %p359_p6 }
  0x14   :  { %p362_p9 = pnand %p361_p8, %p355_p5 }
  0x16   :  { %365 = shalt.err (!%p362_p9)
}
  0x17   :  { %37 = dma.hbm_to_vmem [thread:$0]  %s453_s2, 256, %s32_s23, [#allocation5], %s371_s18, %s371_s18, %s372_s19  }
  0x18   :  { %366 = dma.done.wait [#allocation3], 512  }
  0x19   :  { %367 = vsyncadd [#allocation3], 4294966784 }
  0x1a   :  { %368 = dma.done.wait [#allocation5], 256  }
  0x1b   :  { %369 = vsyncadd [#allocation5], 4294967040  ;;  %vm50_vm0 = vcmask 130048   ;;  %v149_v0 = vld [vmem:[#allocation4 + $0x8] sm:$0xff]  ;;  %v148_v1 = vld [vmem:[#allocation4] sm:$0xff]  ;;  %vm235_vm1 = vcmask 261120  }
  0x1c   :  { %v44_v2 = vld [vmem:[#allocation2] sm:$0xff]  ;;  %304 = vmatprep.subr.mxu1 %v149_v0  ;;  %v45_v3 = vld [vmem:[#allocation2 + $0x8] sm:$0xff]  ;;  %v46_v6 = vld [vmem:[#allocation2 + $0x10] sm:$0xff] }
  0x1d   :  { %308 = vmatprep.mubr.msk.f32.mxu1 %vm50_vm0, %v44_v2  ;;  %305 = vmatpush3.msra.mxu1 %v149_v0  ;;  %v49_v4 = vld [vmem:[%s452_s1 + $0x8] sm:$0xff]  ;;  %v48_v5 = vld [vmem:[%s452_s1] sm:$0xff]  ;;  %v47_v7 = vld [vmem:[#allocation2 + $0x18] sm:$0xff] }
  0x1e   :  { %298 = vmatprep.mubr.msk.f32.mxu0 %vm50_vm0, %v44_v2  ;;  %306 = vmatprep.subr.mxu1 %v148_v1 }
  0x1f   :  { %294 = vmatprep.subr.mxu0 %v49_v4  ;;  %307 = vmatpush3.msra.mxu1 %v148_v1 }
  0x20   :  { %295 = vmatpush3.msra.mxu0 %v49_v4  ;;  %309 = vmatmul.mubr.msk.f32.vlgmr.msra.gmra.mxu1 %vm50_vm0, %v45_v3 }
  0x21   :  { %296 = vmatprep.subr.mxu0 %v48_v5  ;;  %311 = vmatprep.mubr.msk.f32.mxu1 %vm50_vm0, %v46_v6 }
  0x22   :  { %297 = vmatpush3.msra.mxu0 %v48_v5 }
  0x23   :  { %299 = vmatmul.mubr.msk.f32.vlgmr.msra.gmra.mxu0 %vm50_vm0, %v45_v3 }
  0x24   :  { %301 = vmatprep.mubr.msk.f32.mxu0 %vm50_vm0, %v46_v6  ;;  %312 = vmatmul.mubr.msk.f32.gmra.mxu1 %vm50_vm0, %v47_v7 }
  0x27   :  { %302 = vmatmul.mubr.msk.f32.gmra.mxu0 %vm50_vm0, %v47_v7 }
  0xe0   :  { %v310_v8 = vpop.f32.mrf.mxu1 }
  0xe1   :  { %v245_v9 = vmul.f32 0.70710677, %v310_v8  ;;  %v241_v21 = vmul.f32 0.5, %v310_v8 }
  0xe2   :  { %v216_v10 = vpop.f32.mrf.mxu1 }
  0xe3   :  { %v300_v11 = vpop.f32.mrf.mxu0  ;;  %318 = verf.f32 %v245_v9  ;;  %v244_v12 = vmul.f32 0.70710677, %v216_v10  ;;  %v240_v25 = vmul.f32 0.5, %v216_v10 }
  0xe4   :  { %237 = vst.msk [vmem:[%s454_s3 + $0x8] sm:$0xff] %vm235_vm1, %v300_v11  ;;  %v313_v13 = vpop.f32.mrf.mxu1 }
  0xe5   :  { %v129_v14 = vpop.f32.mrf.mxu0  ;;  %320 = verf.f32 %v244_v12  ;;  %v247_v15 = vmul.f32 0.70710677, %v313_v13  ;;  %v243_v29 = vmul.f32 0.5, %v313_v13 }
  0xe6   :  { %236 = vst.msk [vmem:[%s454_s3] sm:$0xff] %vm235_vm1, %v129_v14  ;;  %v226_v16 = vpop.f32.mrf.mxu1 }
  0xe7   :  { %v303_v17 = vpop.f32.mrf.mxu0  ;;  %322 = verf.f32 %v247_v15  ;;  %v246_v18 = vmul.f32 0.70710677, %v226_v16  ;;  %v242_v33 = vmul.f32 0.5, %v226_v16 }
  0xe8   :  { %239 = vst.msk [vmem:[%s454_s3 + $0x18] sm:$0xff] %vm235_vm1, %v303_v17 }
  0xe9   :  { %v139_v19 = vpop.f32.mrf.mxu0  ;;  %324 = verf.f32 %v246_v18 }
  0xea   :  { %238 = vst.msk [vmem:[%s454_s3 + $0x10] sm:$0xff] %vm235_vm1, %v139_v19 }
  0xf0   :  { %v319_v20 = vpop.eup %318 }
  0xf1   :  { %v253_v22 = vadd.f32 1.0, %v319_v20 }
  0xf2   :  { %v321_v23 = vpop.eup %320 }
  0xf3   :  { %v257_v24 = vmul.f32 %v253_v22, %v241_v21  ;;  %v252_v26 = vadd.f32 1.0, %v321_v23 }
  0xf4   :  { %v323_v27 = vpop.eup %322 }
  0xf5   :  { %261 = vst.msk [vmem:[%s455_s4 + $0x8] sm:$0xff] %vm235_vm1, %v257_v24  ;;  %v256_v28 = vmul.f32 %v252_v26, %v240_v25  ;;  %v255_v30 = vadd.f32 1.0, %v323_v27 }
  0xf6   :  { %v325_v31 = vpop.eup %324 }
  0xf7   :  { %260 = vst.msk [vmem:[%s455_s4] sm:$0xff] %vm235_vm1, %v256_v28  ;;  %v259_v32 = vmul.f32 %v255_v30, %v243_v29  ;;  %v254_v34 = vadd.f32 1.0, %v325_v31 }
  0xf9   :  { %263 = vst.msk [vmem:[%s455_s4 + $0x18] sm:$0xff] %vm235_vm1, %v259_v32  ;;  %v258_v35 = vmul.f32 %v254_v34, %v242_v33 }
  0xfb   :  { %262 = vst.msk [vmem:[%s455_s4 + $0x10] sm:$0xff] %vm235_vm1, %v258_v35 }
  0xfc   :  { %272 = vsyncpa [#allocation3], 1 }
  0xfd   :  { %273 = vsyncpa [#allocation5], 1 }

// kernel: bss_forward.5
= control target key start
LH: loop header
LB: loop body
LE: loop exit
PB: predicated region body
PF: predicated region fallthrough
CT: control target
= control target key end

     0   :  { %16 = vsyncpa [#allocation10], 0  ;;  %s3104_s0 = inlined_call_operand.vmem [shape: f32[2,32,16], index: 0, kind: input, shape index: {}]   ;;  %s3105_s1 = inlined_call_operand.vmem [shape: f32[2,32,16], index: 1, kind: input, shape index: {}]   ;;  %s3106_s2 = inlined_call_operand.vmem [shape: f32[2,16,16], index: 2, kind: input, shape index: {}]   ;;  %s3107_s3 = inlined_call_operand.vmem [shape: f32[2,1,16], index: 3, kind: input, shape index: {}]   ;;  %s3108_s4 = inlined_call_operand.vmem [shape: f32[2,16,8], index: 4, kind: input, shape index: {}]   ;;  %s3109_s5 = inlined_call_operand.vmem [shape: f32[2,16,8], index: 5, kind: input, shape index: {}]   ;;  %s3110_s6 = inlined_call_operand.vmem [shape: f32[2,16,8], index: 6, kind: input, shape index: {}]   ;;  %s3111_s7 = inlined_call_operand.vmem [shape: f32[2,1,16], index: 7, kind: input, shape index: {}]   ;;  %s3112_s8 = inlined_call_operand.vmem [shape: f32[1,16], index: 8, kind: input, shape index: {}]   ;;  %s3113_s9 = inlined_call_operand.vmem [shape: f32[1,16], index: 9, kind: input, shape index: {}]   ;;  %s3114_s10 = inlined_call_operand.vmem [shape: f32[32,16], index: 10, kind: input, shape index: {}]   ;;  %s3115_s11 = inlined_call_operand.hbm [shape: f32[2,16,16], index: 11, kind: output, shape index: {}]  }
   0x1   :  { %18 = vsyncpa [#allocation10 + $0x1], 0  ;;  %s2667_s17 = smov 0   ;;  %s2669_s18 = smov 0  }
   0x2   :  { %s2671_s19 = smov 0   ;;  %s2673_s20 = smov 0  }
   0x3 LB: > { %s2688_s21 = sadd.s32 4294967295, %s2587_s20   ;;  %s2159_s22 = sadd.s32 4294967294, %s2587_s20   ;;  %s2587_s20 = sphi %s2673_s20, %s3125_s20   ;;  %s2583_s19 = sphi %s2671_s19, %s3124_s19   ;;  %s2579_s18 = sphi %s2669_s18, %s3123_s18   ;;  %s2575_s17 = sphi %s2667_s17, %s3122_s17  }
   0x4   : > { %s2692_s23 = sadd.s32 1, %s2587_s20   ;;  %s272_s24 = sadd.s32 1, %s2583_s19 }
   0x5   : > { %s269_s25 = ssub.s32 %s2587_s20, %s2692_s23  ;;  %p282_p0 = scmp.ne.s32.totalorder %s2583_s19, %s2579_s18 }
   0x6   : > { %p270_p1 = scmp.eq.s32.totalorder %s269_s25, 0  ;;  %p283_p2 = scmp.eq.s32.totalorder %s2688_s21, 1 }
   0x7   : > { %p288_p3 = scmp.ne.s32.totalorder %s2579_s18, %s2575_s17  ;;  %p289_p4 = scmp.eq.s32.totalorder %s2159_s22, 1 }
   0x8   : > { %s2703_s26 = scalar_select %p270_p1, %s2583_s19, %s272_s24  }
   0x9   : > { %p2705_p5 = por %p283_p2, %p282_p0  ;;  %p2709_p6 = por %p289_p4, %p288_p3 }
   0xa   : > { %3117 = sst [smem:[#allocation12_spill]] %s2703_s26  ;;  %p2162_p7 = scmp.ge.s32.totalorder %s2587_s20, 1 }
   0xb   : > { %p350_p8 = scmp.lt.s32.totalorder %s2587_s20, 3 }
   0xd   : > { %p351_p9 = pnand %p2162_p7, %p350_p8 }
   0xe   : > { %s3116_s29 = sand.u32 (!%p351_p9), 1, %s2579_s18   ;;  %p395_p10 = scmp.lt.s32.totalorder (!%p351_p9), %s2688_s21, 1 }
   0xf   : > { %354 = sbr.rel (%p351_p9) target bundleno = 2080 (0x820), region = 64  ;;  %s2725_s15 = sshll.u32 (!%p351_p9), %s3116_s29, 4 }
  0x14   : > { %v419_v0 = vld [vmem:[%s3106_s2 + $0x8] sm:$0xff]  ;;  %v418_v1 = vld [vmem:[%s3106_s2] sm:$0xff]  ;;  %s396_s30 = scalar_select %p395_p10, %s2688_s21, 1  ;;  %vm409_vm0 = vcmask 130048   ;;  %vm683_vm1 = vcmask 64512   ;;  %v2597_v13 = vmov 0.0  }
  0x15   : > { %2294 = vmatprep.subr.mxu0 %v419_v0  ;;  %2399 = vmatprep.subr.mxu1 %v419_v0  ;;  %v597_v2 = vld [vmem:[%s3108_s4 + $0x8] sm:$0xff]  ;;  %v596_v8 = vld [vmem:[%s3108_s4] sm:$0xff]  ;;  %414 = vst.msk [vmem:[#allocation8] sm:$0xff] %vm409_vm0, %v2597_v13  ;;  %415 = vst.msk [vmem:[#allocation8 + $0x8] sm:$0xff] %vm409_vm0, %v2597_v13 }
  0x16   : > { %2295 = vmatpush3.msra.mxu0 %v419_v0  ;;  %2401 = vmatpush3.msra.mxu1 %v419_v0  ;;  %v689_v3 = vld [vmem:[%s3109_s5 + $0x8] sm:$0xff]  ;;  %s2231_s12 = sshll.u32 %s396_s30, 5  ;;  %v688_v9 = vld [vmem:[%s3109_s5] sm:$0xff]  ;;  %416 = vst.msk [vmem:[#allocation8 + $0x10] sm:$0xff] %vm409_vm0, %v2597_v13  ;;  %417 = vst.msk [vmem:[#allocation8 + $0x18] sm:$0xff] %vm409_vm0, %v2597_v13  ;;  %s2855_s30 = scalar_lea.vmem [#allocation9], %s2725_s15 }
  0x17   : > { %2296 = vmatprep.subr.mxu0 %v418_v1  ;;  %2400 = vmatprep.subr.mxu1 %v418_v1  ;;  %s399_s29 = scalar_lea.vmem %s3104_s0, %s2231_s12  ;;  %s2740_s22 = scalar_lea.vmem %s3105_s1, %s2231_s12  ;;  %v2791_v10 = vld [vmem:[%s3110_s6] sm:$0xff]  ;;  %v2796_v11 = vld [vmem:[%s3110_s6 + $0x8] sm:$0xff]  ;;  %782 = vst.msk [vmem:[#allocation7] sm:$0xff] %vm683_vm1, %v2597_v13  ;;  %783 = vst.msk [vmem:[#allocation7 + $0x8] sm:$0xff] %vm683_vm1, %v2597_v13 }
  0x18   : > { %2297 = vmatpush3.msra.mxu0 %v418_v1  ;;  %2402 = vmatpush3.msra.mxu1 %v418_v1  ;;  %v2742_v4 = vld [vmem:[%s399_s29] sm:$0xff]  ;;  %v2744_v5 = vld [vmem:[%s399_s29 + $0x10] sm:$0xff]  ;;  %v2746_v6 = vld [vmem:[%s399_s29 + $0x8] sm:$0xff] }
  0x19   : > { %2304 = vmatprep.subr.mxu1 %v597_v2  ;;  %2314 = vmatprep.subr.mxu0 %v689_v3  ;;  %410 = vst.msk [vmem:[#allocation6] sm:$0xff] %vm409_vm0, %v2742_v4  ;;  %412 = vst.msk [vmem:[#allocation6 + $0x10] sm:$0xff] %vm409_vm0, %v2744_v5  ;;  %v2758_v7 = vld [vmem:[%s399_s29 + $0x18] sm:$0xff]  ;;  %v2801_v12 = vld [vmem:[%s3111_s7] sm:$0x1]  ;;  %s2857_s29 = smov 0  }
  0x1a   : > { %2298 = vmatprep.mubr.msk.f32.mxu0 %vm409_vm0, %v2742_v4  ;;  %2301 = vmatprep.mubr.msk.f32.mxu1 %vm409_vm0, %v2744_v5  ;;  %411 = vst.msk [vmem:[#allocation6 + $0x8] sm:$0xff] %vm409_vm0, %v2746_v6  ;;  %413 = vst.msk [vmem:[#allocation6 + $0x18] sm:$0xff] %vm409_vm0, %v2758_v7  ;;  %v2168_v14 = vld [vmem:[%s3107_s3] ss:$0 sm:$0xff] }
  0x1b   : > { %2299 = vmatmul.mubr.msk.f32.vlgmr.msra.gmra.mxu0 %vm409_vm0, %v2746_v6  ;;  %2302 = vmatmul.mubr.msk.f32.vlgmr.msra.gmra.mxu1 %vm409_vm0, %v2758_v7 }
  0x1c   : > { %2305 = vmatpush3.msra.mxu1 %v597_v2  ;;  %2315 = vmatpush3.msra.mxu0 %v689_v3 }
  0x1d   : > { %2306 = vmatprep.subr.mxu1 %v596_v8  ;;  %2316 = vmatprep.subr.mxu0 %v688_v9 }
  0x1e   : > { %2307 = vmatpush3.msra.mxu1 %v596_v8  ;;  %2308 = vmatprep.mubr.msk.f32.mxu1 %vm409_vm0, %v2742_v4 }
  0x1f   : > { %2317 = vmatpush3.msra.mxu0 %v688_v9  ;;  %2318 = vmatprep.mubr.msk.f32.mxu0 %vm409_vm0, %v2742_v4 }
  0x20   : > { %2309 = vmatmul.mubr.msk.f32.vlgmr.msra.gmra.mxu1 %vm409_vm0, %v2746_v6  ;;  %2319 = vmatmul.mubr.msk.f32.vlgmr.msra.gmra.mxu0 %vm409_vm0, %v2746_v6 }
  0x21   : > { %2311 = vmatprep.mubr.msk.f32.mxu1 %vm409_vm0, %v2744_v5  ;;  %2321 = vmatprep.mubr.msk.f32.mxu0 %vm409_vm0, %v2744_v5 }
  0x24   : > { %2312 = vmatmul.mubr.msk.f32.gmra.mxu1 %vm409_vm0, %v2758_v7  ;;  %2322 = vmatmul.mubr.msk.f32.gmra.mxu0 %vm409_vm0, %v2758_v7 }
  0xdb   : > { %v2300_v15 = vpop.f32.mrf.mxu0  ;;  %v2303_v16 = vpop.f32.mrf.mxu1 }
  0xdc   : > { %v2818_v17 = vadd.f32 %v2300_v15, %v2168_v14  ;;  %v2820_v18 = vadd.f32 %v2303_v16, %v2168_v14 }
  0xdd   : > { %v505_v19 = vpop.f32.mrf.mxu0  ;;  %v515_v20 = vpop.f32.mrf.mxu1 }
  0xde   : > { %v529_v21 = vand.u32 2147483647, %v2818_v17  ;;  %v531_v22 = vand.u32 2147483647, %v2820_v18  ;;  %v2824_v23 = vadd.f32 %v2168_v14, %v505_v19  ;;  %v2826_v24 = vadd.f32 %v2168_v14, %v515_v20 }
  0xdf   : > { %v525_v60 = vmax.f32 %v2818_v17, 0.0  ;;  %v527_v16 = vmax.f32 %v2820_v18, 0.0 }
  0xe0   : > { %v533_v25 = vsub.f32 0.0, %v529_v21  ;;  %v535_v26 = vsub.f32 0.0, %v531_v22  ;;  %v2310_v27 = vpop.f32.mrf.mxu1  ;;  %v2320_v28 = vpop.f32.mrf.mxu0  ;;  %v528_v29 = vand.u32 2147483647, %v2824_v23  ;;  %v530_v30 = vand.u32 2147483647, %v2826_v24 }
  0xe1   : > { %685 = vst.msk [vmem:[#allocation4 + $0x8] sm:$0xff] %vm683_vm1, %v2310_v27  ;;  %776 = vst.msk [vmem:[#allocation5 + $0x8] sm:$0xff] %vm683_vm1, %v2320_v28  ;;  %v524_v19 = vmax.f32 %v2824_v23, 0.0  ;;  %v526_v18 = vmax.f32 %v2826_v24, 0.0 }
  0xe2   : > { %v538_v31 = vmul.f32 1.442695, %v533_v25  ;;  %v542_v32 = vmul.f32 1.442695, %v535_v26  ;;  %v664_v33 = vpop.f32.mrf.mxu1  ;;  %v756_v34 = vpop.f32.mrf.mxu0  ;;  %v532_v35 = vsub.f32 0.0, %v528_v29  ;;  %v534_v36 = vsub.f32 0.0, %v530_v30 }
  0xe3   : > { %684 = vst.msk [vmem:[#allocation4] sm:$0xff] %vm683_vm1, %v664_v33  ;;  %775 = vst.msk [vmem:[#allocation5] sm:$0xff] %vm683_vm1, %v756_v34 }
  0xe4   : > { %2471 = vpow2.f32 %v538_v31  ;;  %v2313_v37 = vpop.f32.mrf.mxu1  ;;  %v2323_v38 = vpop.f32.mrf.mxu0  ;;  %v536_v39 = vmul.f32 1.442695, %v532_v35  ;;  %v540_v40 = vmul.f32 1.442695, %v534_v36 }
  0xe5   : > { %2473 = vpow2.f32 %v542_v32  ;;  %687 = vst.msk [vmem:[#allocation4 + $0x18] sm:$0xff] %vm683_vm1, %v2313_v37  ;;  %778 = vst.msk [vmem:[#allocation5 + $0x18] sm:$0xff] %vm683_vm1, %v2323_v38 }
  0xe6   : > { %v674_v41 = vpop.f32.mrf.mxu1  ;;  %v766_v42 = vpop.f32.mrf.mxu0  ;;  %2475 = vpow2.f32 %v536_v39 }
  0xe7   : > { %686 = vst.msk [vmem:[#allocation4 + $0x10] sm:$0xff] %vm683_vm1, %v674_v41  ;;  %777 = vst.msk [vmem:[#allocation5 + $0x10] sm:$0xff] %vm683_vm1, %v766_v42  ;;  %2477 = vpow2.f32 %v540_v40 }
  0xf1   : > { %v2472_v43 = vpop.eup %2471 }
  0xf2   : > { %v2474_v44 = vpop.eup %2473  ;;  %v553_v45 = vadd.f32 1.0, %v2472_v43  ;;  %v556_v51 = vmul.f32 -0.5, %v2472_v43  ;;  %v559_v56 = vand.u32 2147483647, %v2472_v43 }
  0xf3   : > { %v571_v46 = vadd.f32 1.0, %v2474_v44  ;;  %v2476_v47 = vpop.eup %2475  ;;  %v574_v52 = vmul.f32 -0.5, %v2474_v44  ;;  %v577_v58 = vand.u32 2147483647, %v2474_v44 }
  0xf4   : > { %2479 = vlog2.f32 %v553_v45  ;;  %v2478_v48 = vpop.eup %2477  ;;  %v544_v49 = vadd.f32 1.0, %v2476_v47  ;;  %v547_v53 = vmul.f32 -0.5, %v2476_v47  ;;  %v557_v54 = vadd.f32 1.0, %v556_v51 }
  0xf5   : > { %2481 = vlog2.f32 %v571_v46  ;;  %v562_v50 = vadd.f32 1.0, %v2478_v48  ;;  %v565_v55 = vmul.f32 -0.5, %v2478_v48  ;;  %v575_v57 = vadd.f32 1.0, %v574_v52 }
  0xf6   : > { %2483 = vlog2.f32 %v544_v49  ;;  %v548_v61 = vadd.f32 1.0, %v547_v53  ;;  %v558_v0 = vmul.f32 %v2472_v43, %v557_v54  ;;  %v550_v1 = vand.u32 2147483647, %v2476_v47 }
  0xf7   : > { %2485 = vlog2.f32 %v562_v50  ;;  %v566_v2 = vadd.f32 1.0, %v565_v55  ;;  %vm560_vm2 = vcmp.lt.f32.partialorder %v559_v56, 0.0004427343  ;;  %v576_v8 = vmul.f32 %v2474_v44, %v575_v57 }
  0xf8   : > { %v568_v9 = vand.u32 2147483647, %v2478_v48  ;;  %vm578_vm3 = vcmp.lt.f32.partialorder %v577_v58, 0.0004427343  ;;  %v549_v25 = vmul.f32 %v2476_v47, %v548_v61  ;;  %vm551_vm4 = vcmp.lt.f32.partialorder %v550_v1, 0.0004427343 }
  0xf9   : > { %v567_v28 = vmul.f32 %v2478_v48, %v566_v2 }
  0xfa   : > { %vm569_vm5 = vcmp.lt.f32.partialorder %v568_v9, 0.0004427343 }
 0x101   : > { %v2480_v59 = vpop.eup %2479 }
 0x102   : > { %v2482_v62 = vpop.eup %2481  ;;  %v555_v63 = vmul.f32 0.6931472, %v2480_v59 }
 0x103   : > { %v573_v3 = vmul.f32 0.6931472, %v2482_v62  ;;  %v2484_v14 = vpop.eup %2483 }
 0x104   : > { %v561_v15 = vsel %vm560_vm2, %v558_v0, %v555_v63  ;;  %v2486_v20 = vpop.eup %2485  ;;  %v546_v22 = vmul.f32 0.6931472, %v2484_v14 }
 0x105   : > { %v581_v21 = vadd.f32 %v561_v15, %v525_v60  ;;  %v579_v17 = vsel %vm578_vm3, %v576_v8, %v573_v3  ;;  %v564_v27 = vmul.f32 0.6931472, %v2486_v20 }
 0x106   : > { %v583_v26 = vadd.f32 %v579_v17, %v527_v16  ;;  %v552_v30 = vsel %vm551_vm4, %v549_v25, %v546_v22 }
 0x107   : > { %585 = vst.msk [vmem:[#allocation2 + $0x8] sm:$0xff] %vm409_vm0, %v581_v21  ;;  %v589_v29 = vmul.f32 %v581_v21, %v2746_v6  ;;  %v580_v31 = vadd.f32 %v552_v30, %v524_v19  ;;  %v570_v32 = vsel %vm569_vm5, %v567_v28, %v564_v27 }
 0x108   : > { %587 = vst.msk [vmem:[#allocation2 + $0x18] sm:$0xff] %vm409_vm0, %v583_v26  ;;  %v591_v23 = vmul.f32 %v583_v26, %v2758_v7  ;;  %v582_v33 = vadd.f32 %v570_v32, %v526_v18 }
 0x109   : > { %593 = vst.msk [vmem:[#allocation3 + $0x8] sm:$0xff] %vm409_vm0, %v589_v29  ;;  %584 = vst.msk [vmem:[#allocation2] sm:$0xff] %vm409_vm0, %v580_v31  ;;  %v588_v34 = vmul.f32 %v580_v31, %v2742_v4 }
 0x10a   : > { %595 = vst.msk [vmem:[#allocation3 + $0x18] sm:$0xff] %vm409_vm0, %v591_v23  ;;  %586 = vst.msk [vmem:[#allocation2 + $0x10] sm:$0xff] %vm409_vm0, %v582_v33  ;;  %v590_v24 = vmul.f32 %v582_v33, %v2744_v5 }
 0x10b   : > { %592 = vst.msk [vmem:[#allocation3] sm:$0xff] %vm409_vm0, %v588_v34 }
 0x10c   : > { %594 = vst.msk [vmem:[#allocation3 + $0x10] sm:$0xff] %vm409_vm0, %v590_v24 }
 0x10d LB: >> { %vm839_vm6 = vcmask 1040384   ;;  %v2598_v35 = vmov 1.0   ;;  %s790_s12 = scalar_lea.vmem [#allocation2], %s2591_s29  ;;  %s792_s15 = scalar_lea.vmem [#allocation3], %s2591_s29  ;;  %vm832_vm7 = vcmask 7168   ;;  %v2599_v43 = vmov 0.0   ;;  %s2591_s29 = sphi %s2857_s29, %s789_s29  }
 0x10e   : >> { %2324 = vmatprep.subr.msk.mxu1 %vm839_vm6, %v2598_v35  ;;  %s794_s13 = scalar_lea.vmem [#allocation4], %s2591_s29  ;;  %2334 = vmatprep.subr.mxu0 %v2599_v43  ;;  %vm2600_vm8 = vmmov 0   ;;  %v1041_v50 = vld [vmem:[#allocation7 + $0x8] sm:$0xff]  ;;  %v1040_v53 = vld [vmem:[#allocation7] sm:$0xff]  ;;  %s796_s14 = scalar_lea.vmem [#allocation5], %s2591_s29  ;;  %vm1131_vm9 = vcmask 122880  }
 0x10f   : >> { %2325 = vmatpush3.msk.msra.mxu1 %vm839_vm6, %v2598_v35  ;;  %v795_v38 = vld [vmem:[%s794_s13] sm:$0x1]  ;;  %2338 = vmatprep.mubr.msk.f32.mxu0 %vm2600_vm8, %v2599_v43  ;;  %s798_s16 = scalar_lea.vmem [#allocation6], %s2591_s29  ;;  %s1128_s26 = scalar_lea.vmem [#allocation8], %s2591_s29 }
 0x110   : >> { %2329 = vmatprep.subr.msk.mxu1 %vm839_vm6, %v795_v38  ;;  %v797_v60 = vld [vmem:[%s796_s14] sm:$0x1]  ;;  %s789_s29 = sadd.s32 1, %s2591_s29  }
 0x111   : >> { %v791_v36 = vld [vmem:[%s790_s12] sm:$0x1]  ;;  %p786_p11 = scmp.ge.s32.totalorder %s789_s29, 32  }
 0x112   : >> { %800 = vxpose.xlu0.b32.start.end [1/1] (short) (narrow) %v791_v36, 16  ;;  %v799_v61 = vld [vmem:[%s798_s16] sm:$0x1]  ;;  %v2191_v8 = vld [vmem:[%s3106_s2 + $0x18] sm:$0xff] (%p786_p11)  ;;  %v2190_v9 = vld [vmem:[%s3106_s2 + $0x10] sm:$0xff] (%p786_p11)  ;;  %s2988_s12 = smov (%p786_p11), 0  }
 0x113   : >> { %v793_v37 = vld [vmem:[%s792_s15] sm:$0x1]  ;;  %v1048_v62 = vmul.f32 %v799_v61, %v2801_v12  ;;  %v2198_v12 = vld [vmem:[%s3108_s4 + $0x10] sm:$0xff] (%p786_p11)  ;;  %v2942_v15 = vld [vmem:[%s3110_s6 + $0x18] sm:$0xff] (%p786_p11) }
 0x114   : >> { %v1129_v0 = vld [vmem:[%s1128_s26] sm:$0x1]  ;;  %v2937_v14 = vld [vmem:[%s3110_s6 + $0x10] sm:$0xff] (%p786_p11)  ;;  %v2947_v16 = vld [vmem:[%s3111_s7 + $0x1] sm:$0x1] (%p786_p11) }
 0x115   : > { %v2193_v19 = vld [vmem:[%s3107_s3 + $0x1] ss:$0 sm:$0xff] (%p786_p11) }
 0x117   : >> { %924 = vxpose.xlu0.b32.start.end [1/1] (short) (narrow) %v793_v37, 16 }
 0x18e   : >> { %v816_v39 = vpop.trf.xlu0 }
 0x18f   : >> { %2326 = vmatprep.mubr.msk.f32.mxu1 %vm832_vm7, %v816_v39 }
 0x192   : >> { %v817_v40 = vpop.trf.xlu0 }
 0x193   : >> { %2327 = vmatmul.mubr.msk.f32.vlgmr.msra.gmra.mxu1 %vm832_vm7, %v817_v40 }
 0x194   : >> { %2330 = vmatpush3.msk.msra.mxu1 %vm839_vm6, %v795_v38 }
 0x195   : > { %2403 = vmatprep.subr.mxu1 (%p786_p11), %v2191_v8 }
 0x196   : >> { %v940_v41 = vpop.trf.xlu0 }
 0x197   : >> { %2331 = vmatprep.mubr.msk.f32.mxu1 %vm832_vm7, %v940_v41 }
 0x19a   : >> { %v941_v42 = vpop.trf.xlu0 }
 0x19b   : >> { %2332 = vmatmul.mubr.msk.f32.vlgmr.msra.gmra.mxu1 %vm832_vm7, %v941_v42 }
 0x19c   : > { %2348 = vmatprep.mubr.msk.f32.mxu1 (%p786_p11), %vm409_vm0, %v2744_v5  ;;  %2405 = vmatpush3.msra.mxu1 (%p786_p11), %v2191_v8 }
 0x19d   : > { %2404 = vmatprep.subr.mxu1 (%p786_p11), %v2190_v9 }
 0x19e   : > { %2406 = vmatpush3.msra.mxu1 (%p786_p11), %v2190_v9 }
 0x19f   : > { %2349 = vmatmul.mubr.msk.f32.vlgmr.msra.gmra.mxu1 (%p786_p11), %vm409_vm0, %v2758_v7 }
 0x1a0   : > { %2355 = vmatprep.mubr.msk.f32.mxu1 (%p786_p11), %vm409_vm0, %v2742_v4 }
 0x253   : >> { %v2328_v44 = vpop.f32.mrf.mxu1 }
 0x254   : >> { %v919_v45 = vmul.f32 %v2328_v44, %v2796_v11  ;;  %v2205_v11 = vld [vmem:[%s3109_s5 + $0x18] sm:$0xff] (%p786_p11) }
 0x255   : >> { %v909_v46 = vpop.f32.mrf.mxu1 }
 0x256   : >> { %v922_v47 = vmul.f32 1.442695, %v919_v45  ;;  %v918_v48 = vmul.f32 %v909_v46, %v2791_v10  ;;  %v2199_v10 = vld [vmem:[%s3108_s4 + $0x18] sm:$0xff] (%p786_p11) }
 0x257   : > { %2351 = vmatprep.subr.mxu1 (%p786_p11), %v2199_v10 }
 0x258   : >> { %2487 = vpow2.f32 %v922_v47  ;;  %v920_v49 = vmul.f32 1.442695, %v918_v48  ;;  %2352 = vmatpush3.msra.mxu1 (%p786_p11), %v2199_v10 }
 0x259   : > { %2353 = vmatprep.subr.mxu1 (%p786_p11), %v2198_v12 }
 0x25a   : >> { %2489 = vpow2.f32 %v920_v49  ;;  %2354 = vmatpush3.msra.mxu1 (%p786_p11), %v2198_v12 }
 0x25b   : >> { %v2333_v52 = vpop.f32.mrf.mxu1  ;;  %2356 = vmatmul.mubr.msk.f32.vlgmr.msra.gmra.mxu1 (%p786_p11), %vm409_vm0, %v2746_v6 }
 0x25c   : > { %2358 = vmatprep.mubr.msk.f32.mxu1 (%p786_p11), %vm409_vm0, %v2744_v5 }
 0x25d   : >> { %v1031_v58 = vpop.f32.mrf.mxu1 }
 0x25f   : > { %2359 = vmatmul.mubr.msk.f32.gmra.mxu1 (%p786_p11), %vm409_vm0, %v2758_v7  ;;  %v2350_v21 = vpop.f32.mrf.mxu1 (%p786_p11) }
 0x260   : > { %v2954_v22 = vadd.f32 (%p786_p11), %v2350_v21, %v2193_v19 }
 0x261   : > { %v1220_v26 = vpop.f32.mrf.mxu1 (%p786_p11) }
 0x262   : > { %v1236_v28 = vand.u32 (%p786_p11), 2147483647, %v2954_v22  ;;  %v2960_v30 = vadd.f32 (%p786_p11), %v2193_v19, %v1220_v26 }
 0x264   : > { %v1240_v23 = vsub.f32 (%p786_p11), 0.0, %v1236_v28  ;;  %v1235_v32 = vand.u32 (%p786_p11), 2147483647, %v2960_v30 }
 0x265   : >> { %v2488_v51 = vpop.eup %2487 }
 0x266   : >> { %v1043_v54 = vmul.f32 %v2488_v51, %v1041_v50  ;;  %v1247_v35 = vmul.f32 (%p786_p11), 1.442695, %v1240_v23  ;;  %v1239_v37 = vsub.f32 (%p786_p11), 0.0, %v1235_v32 }
 0x267   : >> { %v2490_v55 = vpop.eup %2489 }
 0x268   : >> { %v1045_v56 = vadd.f32 %v2333_v52, %v1043_v54  ;;  %v1042_v57 = vmul.f32 %v2490_v55, %v1040_v53  ;;  %v1245_v41 = vmul.f32 (%p786_p11), 1.442695, %v1239_v37 }
 0x26a   : >> { %1047 = vst.msk [vmem:[#allocation7 + $0x8] sm:$0xff] %vm683_vm1, %v1045_v56  ;;  %v1044_v59 = vadd.f32 %v1042_v57, %v1031_v58  ;;  %2335 = vmatpush3.xpose.msk.msra.mxu0 %vm683_vm1, %v1045_v56 }
 0x26b   : >> { %2336 = vmatprep.subr.mxu0 %v2599_v43  ;;  %1491 = vst.msk [vmem:[#allocation7 + $0x8] sm:$0xff] (%p786_p11), %vm683_vm1, %v2597_v13 }
 0x26c   : >> { %1046 = vst.msk [vmem:[#allocation7] sm:$0xff] %vm683_vm1, %v1044_v59 }
 0x26d   : > { %1490 = vst.msk [vmem:[#allocation7] sm:$0xff] (%p786_p11), %vm683_vm1, %v2597_v13  ;;  %v2204_v13 = vld [vmem:[%s3109_s5 + $0x10] sm:$0xff] (%p786_p11) }
 0x26e   : >> { %2337 = vmatpush3.xpose.msk.msra.mxu0 %vm683_vm1, %v1044_v59 }
 0x26f   : > { %2341 = vmatprep.subr.mxu0 (%p786_p11), %v2191_v8 }
 0x271   : >> { %2339 = vmatmul.mubr.msk.f32.vlgmr.msra.gmra.mxu0 %vm683_vm1, %v797_v60 }
 0x272   : > { %2345 = vmatprep.mubr.msk.f32.mxu0 (%p786_p11), %vm409_vm0, %v2742_v4  ;;  %2342 = vmatpush3.msra.mxu0 (%p786_p11), %v2191_v8 }
 0x273   : > { %2343 = vmatprep.subr.mxu0 (%p786_p11), %v2190_v9 }
 0x274   : > { %2344 = vmatpush3.msra.mxu0 (%p786_p11), %v2190_v9 }
 0x275   : > { %2346 = vmatmul.mubr.msk.f32.vlgmr.msra.gmra.mxu0 (%p786_p11), %vm409_vm0, %v2746_v6  ;;  %2361 = vmatprep.subr.mxu0 (%p786_p11), %v2205_v11 }
 0x276   : > { %2362 = vmatpush3.msra.mxu0 (%p786_p11), %v2205_v11  ;;  %2365 = vmatprep.mubr.msk.f32.mxu0 (%p786_p11), %vm409_vm0, %v2742_v4 }
 0x277   : > { %2363 = vmatprep.subr.mxu0 (%p786_p11), %v2204_v13 }
 0x278   : > { %2364 = vmatpush3.msra.mxu0 (%p786_p11), %v2204_v13 }
 0x279   : > { %2366 = vmatmul.mubr.msk.f32.vlgmr.msra.gmra.mxu0 (%p786_p11), %vm409_vm0, %v2746_v6 }
 0x27a   : > { %2368 = vmatprep.mubr.msk.f32.mxu0 (%p786_p11), %vm409_vm0, %v2744_v5 }
 0x27d   : > { %2369 = vmatmul.mubr.msk.f32.gmra.mxu0 (%p786_p11), %vm409_vm0, %v2758_v7 }
 0x31b   : > { %v2357_v33 = vpop.f32.mrf.mxu1 (%p786_p11) }
 0x31c   : > { %1390 = vst.msk [vmem:[#allocation4 + $0x8] sm:$0xff] (%p786_p11), %vm683_vm1, %v2357_v33 }
 0x31d   : > { %v1370_v38 = vpop.f32.mrf.mxu1 (%p786_p11) }
 0x31e   : > { %1389 = vst.msk [vmem:[#allocation4] sm:$0xff] (%p786_p11), %vm683_vm1, %v1370_v38 }
 0x31f   : > { %v2360_v42 = vpop.f32.mrf.mxu1 (%p786_p11) }
 0x320   : > { %1392 = vst.msk [vmem:[#allocation4 + $0x18] sm:$0xff] (%p786_p11), %vm683_vm1, %v2360_v42 }
 0x321   : > { %v1380_v44 = vpop.f32.mrf.mxu1 (%p786_p11) }
 0x322   : > { %1391 = vst.msk [vmem:[#allocation4 + $0x10] sm:$0xff] (%p786_p11), %vm683_vm1, %v1380_v44 }
 0x331   : >> { %v1124_v63 = vpop.f32.mrf.mxu0 }
 0x332   : >> { %v1125_v1 = vadd.f32 %v1124_v63, %v1048_v62  ;;  %788 = sbr.rel (!%p786_p11) target bundleno = 269 (0x10d), region = 134 }
 0x333   : >> { %v2340_v2 = vpop.f32.mrf.mxu0 }
 0x334   : >> { %v1130_v3 = vadd.f32 %v1129_v0, %v1125_v1 }
 0x335   : > { %v2347_v20 = vpop.f32.mrf.mxu0 (%p786_p11) }
 0x336   : >> { %1132 = vst.msk [vmem:[%s1128_s26] sm:$0x1] %vm1131_vm9, %v1130_v3  ;;  %v2952_v17 = vadd.f32 (%p786_p11), %v2347_v20, %v2193_v19  ;;  %v1232_v20 = vmax.f32 (%p786_p11), %v2954_v22, 0.0 }
 0x337   : > { %v1210_v25 = vpop.f32.mrf.mxu0 }
 0x338   : > { %v1234_v27 = vand.u32 2147483647, %v2952_v17  ;;  %v2958_v29 = vadd.f32 %v2193_v19, %v1210_v25  ;;  %v1230_v63 = vmax.f32 %v2952_v17, 0.0 }
 0x339   : > { %v2367_v34 = vpop.f32.mrf.mxu0 }
 0x33a   : > { %v1238_v18 = vsub.f32 0.0, %v1234_v27  ;;  %v1233_v31 = vand.u32 2147483647, %v2958_v29  ;;  %1482 = vst.msk [vmem:[#allocation5 + $0x8] sm:$0xff] %vm683_vm1, %v2367_v34  ;;  %v1229_v21 = vmax.f32 %v2958_v29, 0.0  ;;  %v1231_v34 = vmax.f32 %v2960_v30, 0.0 }
 0x33b   : > { %v1462_v39 = vpop.f32.mrf.mxu0 }
 0x33c   : > { %v1243_v24 = vmul.f32 1.442695, %v1238_v18  ;;  %v1237_v36 = vsub.f32 0.0, %v1233_v31  ;;  %1481 = vst.msk [vmem:[#allocation5] sm:$0xff] %vm683_vm1, %v1462_v39 }
 0x33d   : > { %v2370_v43 = vpop.f32.mrf.mxu0 }
 0x33e   : > { %2491 = vpow2.f32 %v1243_v24  ;;  %v1241_v40 = vmul.f32 1.442695, %v1237_v36  ;;  %1484 = vst.msk [vmem:[#allocation5 + $0x18] sm:$0xff] %vm683_vm1, %v2370_v43 }
 0x33f   : > { %2493 = vpow2.f32 %v1247_v35  ;;  %v1472_v45 = vpop.f32.mrf.mxu0 }
 0x340   : > { %2495 = vpow2.f32 %v1241_v40  ;;  %1483 = vst.msk [vmem:[#allocation5 + $0x10] sm:$0xff] %vm683_vm1, %v1472_v45 }
 0x341   : > { %2497 = vpow2.f32 %v1245_v41 }
 0x34b   : > { %v2492_v46 = vpop.eup %2491 }
 0x34c   : > { %v2494_v47 = vpop.eup %2493  ;;  %v1258_v48 = vadd.f32 1.0, %v2492_v46  ;;  %v1261_v54 = vmul.f32 -0.5, %v2492_v46  ;;  %v1264_v59 = vand.u32 2147483647, %v2492_v46 }
 0x34d   : > { %v1276_v49 = vadd.f32 1.0, %v2494_v47  ;;  %v2496_v50 = vpop.eup %2495  ;;  %v1279_v55 = vmul.f32 -0.5, %v2494_v47  ;;  %v1282_v61 = vand.u32 2147483647, %v2494_v47 }
 0x34e   : > { %2499 = vlog2.f32 %v1258_v48  ;;  %v2498_v51 = vpop.eup %2497  ;;  %v1249_v52 = vadd.f32 1.0, %v2496_v50  ;;  %v1252_v56 = vmul.f32 -0.5, %v2496_v50  ;;  %v1262_v57 = vadd.f32 1.0, %v1261_v54 }
 0x34f   : > { %2501 = vlog2.f32 %v1276_v49  ;;  %v1267_v53 = vadd.f32 1.0, %v2498_v51  ;;  %v1270_v58 = vmul.f32 -0.5, %v2498_v51  ;;  %v1280_v60 = vadd.f32 1.0, %v1279_v55 }
 0x350   : > { %2503 = vlog2.f32 %v1249_v52  ;;  %v1253_v0 = vadd.f32 1.0, %v1252_v56  ;;  %v1263_v3 = vmul.f32 %v2492_v46, %v1262_v57  ;;  %v1255_v8 = vand.u32 2147483647, %v2496_v50 }
 0x351   : > { %2505 = vlog2.f32 %v1267_v53  ;;  %v1271_v9 = vadd.f32 1.0, %v1270_v58  ;;  %vm1265_vm10 = vcmp.lt.f32.partialorder %v1264_v59, 0.0004427343  ;;  %v1281_v11 = vmul.f32 %v2494_v47, %v1280_v60 }
 0x352   : > { %v1273_v12 = vand.u32 2147483647, %v2498_v51  ;;  %vm1283_vm11 = vcmp.lt.f32.partialorder %v1282_v61, 0.0004427343  ;;  %v1254_v28 = vmul.f32 %v2496_v50, %v1253_v0  ;;  %vm1256_vm12 = vcmp.lt.f32.partialorder %v1255_v8, 0.0004427343 }
 0x353   : > { %v1272_v31 = vmul.f32 %v2498_v51, %v1271_v9 }
 0x354   : > { %vm1274_vm13 = vcmp.lt.f32.partialorder %v1273_v12, 0.0004427343 }
 0x35b   : > { %v2500_v62 = vpop.eup %2499 }
 0x35c   : > { %v2502_v1 = vpop.eup %2501  ;;  %v1260_v2 = vmul.f32 0.6931472, %v2500_v62 }
 0x35d   : > { %v1278_v10 = vmul.f32 0.6931472, %v2502_v1  ;;  %v2504_v13 = vpop.eup %2503 }
 0x35e   : > { %v1266_v19 = vsel %vm1265_vm10, %v1263_v3, %v1260_v2  ;;  %v2506_v25 = vpop.eup %2505  ;;  %v1251_v27 = vmul.f32 0.6931472, %v2504_v13 }
 0x35f   : > { %v1286_v26 = vadd.f32 %v1266_v19, %v1230_v63  ;;  %v1284_v17 = vsel %vm1283_vm11, %v1281_v11, %v1278_v10  ;;  %v1269_v23 = vmul.f32 0.6931472, %v2506_v25 }
 0x360   : > { %v1288_v18 = vadd.f32 %v1284_v17, %v1232_v20  ;;  %v1257_v33 = vsel %vm1256_vm12, %v1254_v28, %v1251_v27 }
 0x361   : > { %1290 = vst.msk [vmem:[#allocation2 + $0x8] sm:$0xff] %vm409_vm0, %v1286_v26  ;;  %v1294_v32 = vmul.f32 %v1286_v26, %v2746_v6  ;;  %v1285_v29 = vadd.f32 %v1257_v33, %v1229_v21  ;;  %v1275_v24 = vsel %vm1274_vm13, %v1272_v31, %v1269_v23 }
 0x362   : > { %1292 = vst.msk [vmem:[#allocation2 + $0x18] sm:$0xff] %vm409_vm0, %v1288_v18  ;;  %v1296_v22 = vmul.f32 %v1288_v18, %v2758_v7  ;;  %v1287_v35 = vadd.f32 %v1275_v24, %v1231_v34 }
 0x363   : > { %1298 = vst.msk [vmem:[#allocation3 + $0x8] sm:$0xff] %vm409_vm0, %v1294_v32  ;;  %1289 = vst.msk [vmem:[#allocation2] sm:$0xff] %vm409_vm0, %v1285_v29  ;;  %v1293_v36 = vmul.f32 %v1285_v29, %v2742_v4 }
 0x364   : > { %1300 = vst.msk [vmem:[#allocation3 + $0x18] sm:$0xff] %vm409_vm0, %v1296_v22  ;;  %1291 = vst.msk [vmem:[#allocation2 + $0x10] sm:$0xff] %vm409_vm0, %v1287_v35  ;;  %v1295_v6 = vmul.f32 %v1287_v35, %v2744_v5 }
 0x365   : > { %1297 = vst.msk [vmem:[#allocation3] sm:$0xff] %vm409_vm0, %v1293_v36 }
 0x366   : > { %1299 = vst.msk [vmem:[#allocation3 + $0x10] sm:$0xff] %vm409_vm0, %v1295_v6 }
 0x367 LB: >> { %v2601_v7 = vmov 1.0   ;;  %s1498_s15 = scalar_lea.vmem [#allocation2], %s2595_s12  ;;  %s1500_s29 = scalar_lea.vmem [#allocation3], %s2595_s12  ;;  %v2602_v41 = vmov 0.0   ;;  %vm2603_vm14 = vmmov 0   ;;  %v1749_v48 = vld [vmem:[#allocation7 + $0x8] sm:$0xff]  ;;  %s2595_s12 = sphi %s2988_s12, %s1497_s12  }
 0x368   : >> { %2371 = vmatprep.subr.msk.mxu1 %vm839_vm6, %v2601_v7  ;;  %s1502_s13 = scalar_lea.vmem [#allocation4], %s2595_s12  ;;  %2381 = vmatprep.subr.mxu0 %v2602_v41  ;;  %v1748_v51 = vld [vmem:[#allocation7] sm:$0xff]  ;;  %s1504_s14 = scalar_lea.vmem [#allocation5], %s2595_s12 }
 0x369   : >> { %2372 = vmatpush3.msk.msra.mxu1 %vm839_vm6, %v2601_v7  ;;  %v1503_v30 = vld [vmem:[%s1502_s13] sm:$0x1]  ;;  %2385 = vmatprep.mubr.msk.f32.mxu0 %vm2603_vm14, %v2602_v41  ;;  %s1506_s16 = scalar_lea.vmem [#allocation6], %s2595_s12  ;;  %s1836_s26 = ssub.s32 31, %s2595_s12 }
 0x36a   : >> { %2376 = vmatprep.subr.msk.mxu1 %vm839_vm6, %v1503_v30  ;;  %v1505_v58 = vld [vmem:[%s1504_s14] sm:$0x1]  ;;  %s1837_s24 = scalar_lea.vmem [#allocation8], %s1836_s26  ;;  %s1497_s12 = sadd.s32 1, %s2595_s12  }
 0x36b   : >> { %v1499_v4 = vld [vmem:[%s1498_s15] sm:$0x1]  ;;  %p1494_p12 = scmp.ge.s32.totalorder %s1497_s12, 32  }
 0x36c   : >> { %1508 = vxpose.xlu0.b32.start.end [1/1] (short) (narrow) %v1499_v4, 16  ;;  %v1507_v59 = vld [vmem:[%s1506_s16] sm:$0x1]  ;;  %v1932_v35 = vld [vmem:[%s3114_s10 + $0x18] sm:$0xff] (%p1494_p12)  ;;  %v1931_v36 = vld [vmem:[%s3114_s10 + $0x10] sm:$0xff] (%p1494_p12)  ;;  %vm1965_vm15 = vcmask (%p1494_p12), 261120  }
 0x36d   : >> { %v1501_v5 = vld [vmem:[%s1500_s29] sm:$0x1]  ;;  %v1756_v60 = vmul.f32 %v2947_v16, %v1507_v59  ;;  %s2233_s29 = sshll.u32 (%p1494_p12), %s2688_s21, 8  ;;  %s2063_s13 = sshll.u32 (%p1494_p12), %s2855_s30, 4  ;;  %s3056_s13 = int_to_ptr.vmem [resolvable:$true] %s2063_s13 }
 0x36e   : >> { %v1838_v62 = vld [vmem:[%s1837_s24] sm:$0x1]  ;;  %s3054_s26 = scalar_lea.hbm (%p1494_p12), %s3115_s11, %s2233_s29  ;;  %s2519_s21 = scalar_lea.vmem (%p1494_p12), %s3056_s13, 256 }
 0x36f   : > { %p2520_p13 = scmp.ne.s32.totalorder (%p1494_p12), %s3056_s13, %s2519_s21  ;;  %s2604_s25 = smov (%p1494_p12), [#allocation9]  }
 0x370   : > { %s2523_s12 = sshll.u32 (%p1494_p12), %s2604_s25, 4  ;;  %s2524_s12 = int_to_ptr.vmem [resolvable:$false] %s2523_s12 }
 0x371   : >> { %1632 = vxpose.xlu0.b32.start.end [1/1] (short) (narrow) %v1501_v5, 16  ;;  %p2521_p0 = pnand (%p1494_p12), %p2520_p13, %p2705_p5  ;;  %s2525_s15 = scalar_lea.vmem (%p1494_p12), %s2524_s12, 512 }
 0x372   : > { %p2526_p2 = scmp.lt.s32.totalorder (%p1494_p12), %s3056_s13, %s2524_s12  ;;  %p2527_p3 = scmp.lt.s32.totalorder (%p1494_p12), %s2525_s15, %s2519_s21 }
 0x373   : > { %p2522_p1 = pneg (%p1494_p12), %p2521_p0 }
 0x374   : > { %p2528_p4 = por (%p1494_p12), %p2527_p3, %p2526_p2 }
 0x376   : > { %p2529_p7 = pnand (%p1494_p12), %p2528_p4, %p2522_p1 }
 0x3e8   : >> { %v1524_v37 = vpop.trf.xlu0 }
 0x3e9   : >> { %2373 = vmatprep.mubr.msk.f32.mxu1 %vm832_vm7, %v1524_v37 }
 0x3ec   : >> { %v1525_v38 = vpop.trf.xlu0 }
 0x3ed   : >> { %2374 = vmatmul.mubr.msk.f32.vlgmr.msra.gmra.mxu1 %vm832_vm7, %v1525_v38 }
 0x3ee   : >> { %2377 = vmatpush3.msk.msra.mxu1 %vm839_vm6, %v1503_v30 }
 0x3f0   : >> { %v1648_v39 = vpop.trf.xlu0 }
 0x3f1   : >> { %2378 = vmatprep.mubr.msk.f32.mxu1 %vm832_vm7, %v1648_v39 }
 0x3f4   : >> { %v1649_v40 = vpop.trf.xlu0 }
 0x3f5   : >> { %2379 = vmatmul.mubr.msk.f32.vlgmr.msra.gmra.mxu1 %vm832_vm7, %v1649_v40 }
 0x4ad   : >> { %v2375_v42 = vpop.f32.mrf.mxu1 }
 0x4ae   : >> { %v1627_v43 = vmul.f32 %v2375_v42, %v2942_v15 }
 0x4af   : >> { %v1617_v44 = vpop.f32.mrf.mxu1 }
 0x4b0   : >> { %v1630_v45 = vmul.f32 1.442695, %v1627_v43  ;;  %v1626_v46 = vmul.f32 %v2937_v14, %v1617_v44 }
 0x4b2   : >> { %2507 = vpow2.f32 %v1630_v45  ;;  %v1628_v47 = vmul.f32 1.442695, %v1626_v46  ;;  %v2222_v45 = vld [vmem:[%s3112_s8] ss:$0 sm:$0xff] (%p1494_p12) }
 0x4b4   : >> { %2509 = vpow2.f32 %v1628_v47  ;;  %v2223_v47 = vld [vmem:[%s3113_s9] ss:$0 sm:$0xff] (%p1494_p12) }
 0x4b5   : >> { %v2380_v50 = vpop.f32.mrf.mxu1 }
 0x4b7   : >> { %v1739_v56 = vpop.f32.mrf.mxu1 }
 0x4bf   : >> { %v2508_v49 = vpop.eup %2507 }
 0x4c0   : >> { %v1751_v52 = vmul.f32 %v2508_v49, %v1749_v48 }
 0x4c1   : >> { %v2510_v53 = vpop.eup %2509 }
 0x4c2   : >> { %v1753_v54 = vadd.f32 %v2380_v50, %v1751_v52  ;;  %v1750_v55 = vmul.f32 %v2510_v53, %v1748_v51  ;;  %v1921_v50 = vld [vmem:[%s2740_s22] sm:$0xff] (%p1494_p12) }
 0x4c4   : >> { %1755 = vst.msk [vmem:[#allocation7 + $0x8] sm:$0xff] %vm683_vm1, %v1753_v54  ;;  %v1752_v57 = vadd.f32 %v1750_v55, %v1739_v56  ;;  %2382 = vmatpush3.xpose.msk.msra.mxu0 %vm683_vm1, %v1753_v54  ;;  %v1930_v54 = vld [vmem:[%s3114_s10 + $0x8] sm:$0xff] (%p1494_p12)  ;;  %v1929_v56 = vld [vmem:[%s3114_s10] sm:$0xff] (%p1494_p12) }
 0x4c5   : >> { %2383 = vmatprep.subr.mxu0 %v2602_v41 }
 0x4c6   : >> { %1754 = vst.msk [vmem:[#allocation7] sm:$0xff] %vm683_vm1, %v1752_v57 }
 0x4c8   : >> { %2384 = vmatpush3.xpose.msk.msra.mxu0 %vm683_vm1, %v1752_v57 }
 0x4c9   : > { %2388 = vmatprep.subr.mxu0 (%p1494_p12), %v1932_v35 }
 0x4cb   : >> { %2386 = vmatmul.mubr.msk.f32.vlgmr.msra.gmra.mxu0 %vm683_vm1, %v1505_v58 }
 0x4cc   : > { %2389 = vmatpush3.msra.mxu0 (%p1494_p12), %v1932_v35 }
 0x4cd   : > { %2390 = vmatprep.subr.mxu0 (%p1494_p12), %v1931_v36 }
 0x4ce   : > { %2391 = vmatpush3.msra.mxu0 (%p1494_p12), %v1931_v36 }
 0x4cf   : > { %2392 = vmatprep.subr.mxu0 (%p1494_p12), %v1930_v54 }
 0x4d0   : > { %2393 = vmatpush3.msra.mxu0 (%p1494_p12), %v1930_v54 }
 0x4d1   : > { %2394 = vmatprep.subr.mxu0 (%p1494_p12), %v1929_v56 }
 0x4d2   : > { %2395 = vmatpush3.msra.mxu0 (%p1494_p12), %v1929_v56 }
 0x58b   : >> { %v1832_v61 = vpop.f32.mrf.mxu0 }
 0x58c   : >> { %v1833_v63 = vadd.f32 %v1832_v61, %v1756_v60  ;;  %1496 = sbr.rel (!%p1494_p12) target bundleno = 871 (0x367), region = 145  ;;  %v1922_v60 = vld [vmem:[%s2740_s22 + $0x8] sm:$0xff] (%p1494_p12) }
 0x58d   : >> { %v2387_v0 = vpop.f32.mrf.mxu0 }
 0x58e   : >> { %v1839_v1 = vadd.f32 %v1838_v62, %v1833_v63 }
 0x590   : >> { %1841 = vst.msk [vmem:[%s1837_s24] sm:$0x1] %vm1131_vm9, %v1839_v1 }
 0x597   : > { %v1842_v2 = vld [vmem:[#allocation8] sm:$0xff]  ;;  %v1844_v3 = vld [vmem:[#allocation8 + $0x10] sm:$0xff]  ;;  %v1843_v8 = vld [vmem:[#allocation8 + $0x8] sm:$0xff] }
 0x598   : > { %v1846_v9 = vsel %vm409_vm0, %v1842_v2, 0.0  ;;  %v1852_v10 = vsel %vm409_vm0, %v1844_v3, 0.0  ;;  %v1845_v11 = vld [vmem:[#allocation8 + $0x18] sm:$0xff]  ;;  %v1849_v12 = vsel %vm409_vm0, %v1843_v8, 0.0 }
 0x599   : > { %1847 = vadd.xlane.f32.xlu0 %v1846_v9  ;;  %1853 = vadd.xlane.f32.xlu1 %v1852_v10  ;;  %v1855_v13 = vsel %vm409_vm0, %v1845_v11, 0.0  ;;  %v1924_v10 = vld [vmem:[%s2740_s22 + $0x18] sm:$0xff] }
 0x59d   : > { %1850 = vadd.xlane.f32.xlu0 %v1849_v12  ;;  %1856 = vadd.xlane.f32.xlu1 %v1855_v13 }
 0x622   : > { %v1848_v19 = vpop.xlane.xlu0 %1847  ;;  %v1854_v20 = vpop.xlane.xlu1 %1853 }
 0x623   : > { %v1859_v21 = vmul.f32 0.0625, %v1848_v19  ;;  %v1861_v25 = vmul.f32 0.0625, %v1854_v20 }
 0x625   : > { %v1863_v14 = vsub.f32 %v1842_v2, %v1859_v21  ;;  %v1865_v15 = vsub.f32 %v1844_v3, %v1861_v25  ;;  %v1923_v3 = vld [vmem:[%s2740_s22 + $0x10] sm:$0xff]  ;;  %s3120_s22 = sand.u32 1, %s2579_s18  }
 0x626   : > { %v1851_v16 = vpop.xlane.xlu0 %1850  ;;  %v1857_v26 = vpop.xlane.xlu1 %1856  ;;  %s3064_s24 = scalar_lea.sflag [#allocation10], %s3120_s22 }
 0x627   : > { %v1860_v17 = vmul.f32 0.0625, %v1851_v16  ;;  %v1862_v27 = vmul.f32 0.0625, %v1857_v26  ;;  %v1867_v28 = vmul.f32 %v1863_v14, %v1863_v14  ;;  %v1869_v18 = vmul.f32 %v1865_v15, %v1865_v15 }
 0x629   : > { %v1864_v23 = vsub.f32 %v1843_v8, %v1860_v17  ;;  %v1866_v31 = vsub.f32 %v1845_v11, %v1862_v27  ;;  %v1871_v32 = vsel %vm409_vm0, %v1867_v28, 0.0  ;;  %v1877_v33 = vsel %vm409_vm0, %v1869_v18, 0.0 }
 0x62a   : > { %1872 = vadd.xlane.f32.xlu0 %v1871_v32 }
 0x62b   : > { %v1868_v34 = vmul.f32 %v1864_v23, %v1864_v23  ;;  %v1870_v22 = vmul.f32 %v1866_v31, %v1866_v31 }
 0x62d   : > { %v1874_v29 = vsel %vm409_vm0, %v1868_v34, 0.0  ;;  %v1880_v24 = vsel %vm409_vm0, %v1870_v22, 0.0 }
 0x62e   : > { %1878 = vadd.xlane.f32.xlu0 %v1877_v33  ;;  %1875 = vadd.xlane.f32.xlu1 %v1874_v29 }
 0x632   : > { %1881 = vadd.xlane.f32.xlu1 %v1880_v24 }
 0x6b3   : > { %v1873_v6 = vpop.xlane.xlu0 %1872 }
 0x6b4   : > { %v1883_v7 = vmul.f32 0.0625, %v1873_v6 }
 0x6b6   : > { %v1887_v4 = vadd.f32 1e-05, %v1883_v7 }
 0x6b7   : > { %v1876_v5 = vpop.xlane.xlu1 %1875  ;;  %v1879_v30 = vpop.xlane.xlu0 %1878 }
 0x6b8   : > { %2511 = vrsqrt.f32 %v1887_v4  ;;  %v1884_v37 = vmul.f32 0.0625, %v1876_v5  ;;  %v1885_v38 = vmul.f32 0.0625, %v1879_v30 }
 0x6ba   : > { %v1888_v39 = vadd.f32 1e-05, %v1884_v37  ;;  %v1889_v40 = vadd.f32 1e-05, %v1885_v38 }
 0x6bb   : > { %v1882_v41 = vpop.xlane.xlu1 %1881 }
 0x6bc   : > { %2513 = vrsqrt.f32 %v1888_v39  ;;  %v1886_v42 = vmul.f32 0.0625, %v1882_v41 }
 0x6bd   : > { %2515 = vrsqrt.f32 %v1889_v40 }
 0x6be   : > { %v1890_v43 = vadd.f32 1e-05, %v1886_v42 }
 0x6c0   : > { %2517 = vrsqrt.f32 %v1890_v43 }
 0x6c5   : > { %v2512_v44 = vpop.eup %2511 }
 0x6c6   : > { %v1895_v46 = vmul.f32 %v2512_v44, %v1863_v14 }
 0x6c8   : > { %v1906_v48 = vmul.f32 %v2222_v45, %v1895_v46 }
 0x6c9   : > { %v2514_v49 = vpop.eup %2513 }
 0x6ca   : > { %v2516_v51 = vpop.eup %2515  ;;  %v1917_v52 = vadd.f32 %v2223_v47, %v1906_v48  ;;  %v1896_v53 = vmul.f32 %v2514_v49, %v1864_v23 }
 0x6cb   : > { %v1897_v55 = vmul.f32 %v2516_v51, %v1865_v15 }
 0x6cc   : > { %v1925_v57 = vmul.f32 %v1921_v50, %v1917_v52  ;;  %v1907_v58 = vmul.f32 %v2222_v45, %v1896_v53 }
 0x6cd   : > { %v2518_v59 = vpop.eup %2517  ;;  %v1908_v61 = vmul.f32 %v2222_v45, %v1897_v55 }
 0x6ce   : > { %1933 = vxpose.xlu0.b32.start [1/4] (short) (narrow) %v1925_v57, 16  ;;  %v1918_v62 = vadd.f32 %v2223_v47, %v1907_v58  ;;  %v1898_v63 = vmul.f32 %v2518_v59, %v1866_v31 }
 0x6cf   : > { %v1919_v1 = vadd.f32 %v2223_v47, %v1908_v61 }
 0x6d0   : > { %v1926_v0 = vmul.f32 %v1922_v60, %v1918_v62  ;;  %v1909_v2 = vmul.f32 %v2222_v45, %v1898_v63 }
 0x6d1   : > { %v1927_v8 = vmul.f32 %v1923_v3, %v1919_v1 }
 0x6d2   : > { %1934 = vxpose.xlu0.b32.cont [2/4] (short) (narrow) %v1926_v0, 16  ;;  %v1920_v9 = vadd.f32 %v2223_v47, %v1909_v2 }
 0x6d4   : > { %v1928_v11 = vmul.f32 %v1924_v10, %v1920_v9 }
 0x6d6   : > { %1935 = vxpose.xlu0.b32.cont [3/4] (short) (narrow) %v1927_v8, 16 }
 0x6da   : > { %1936 = vxpose.xlu0.b32.end [4/4] (short) (narrow) %v1928_v11, 16 }
 0x74a   : > { %v1949_v12 = vpop.trf.xlu0 }
 0x74b   : > { %2396 = vmatprep.mubr.msk.f32.mxu0 %vm1965_vm15, %v1949_v12 }
 0x74e   : > { %v1950_v13 = vpop.trf.xlu0 }
 0x74f   : > { %2397 = vmatmul.mubr.msk.f32.vlgmr.msra.gmra.mxu0 %vm1965_vm15, %v1950_v13 }
 0x80f   : > { %v2398_v19 = vpop.f32.mrf.mxu0 }
 0x810   : > { %2048 = vst.msk [vmem:[%s2855_s30 + $0x8] sm:$0xff] %vm409_vm0, %v2398_v19 }
 0x811   : > { %v2038_v20 = vpop.f32.mrf.mxu0 }
 0x812   : > { %2047 = vst.msk [vmem:[%s2855_s30] sm:$0xff] %vm409_vm0, %v2038_v20 }
 0x813   : > { %2532 = shalt.err (!%p2529_p7)
}
 0x814   : > { %s2533_s30 = scalar_lea.hbm %s3054_s26, 256  ;;  %s2537_s16 = scalar_lea.hbm %s3115_s11, 512 }
 0x815   : > { %p2534_p8 = scmp.ne.s32.totalorder %s3054_s26, %s2533_s30  ;;  %p2538_p11 = scmp.lt.s32.totalorder %s3054_s26, %s3115_s11 }
 0x816   : > { %p2539_p12 = scmp.lt.s32.totalorder %s2537_s16, %s2533_s30 }
 0x817   : > { %p2535_p9 = pnand %p2534_p8, %p2705_p5 }
 0x818   : > { %p2540_p13 = por %p2539_p12, %p2538_p11 }
 0x819   : > { %p2536_p10 = pneg %p2535_p9 }
 0x81b   : > { %p2541_p0 = pnand %p2540_p13, %p2536_p10 }
 0x81d   : > { %2544 = shalt.err (!%p2541_p0)
}
 0x81e   : > { %s2605_s21 = smov 128   ;;  %s2606_s12 = smov 8  }
 0x81f   : > { %2407 = dma.vmem_to_hbm [thread:$0]  (%p2705_p5), %s3056_s13, 256, %s3054_s26, %s3064_s24, %s2605_s21, %s2605_s21, %s2606_s12  }
 0x820 PF: > { %p2413_p1 = scmp.ge.s32.totalorder %s2587_s20, 2  ;;  %s2078_s15 = sand.u32 1, %s2575_s17  }
 0x821   : > { %s2079_s30 = scalar_lea.sflag [#allocation10], %s2078_s15 }
 0x822   : > { %p2410_p2 = pnand %p2413_p1, %p2709_p6 }
 0x824   : > { %p2411_p3 = pneg %p2410_p2 }
 0x826   : > { %2570 = dma.done.wait (%p2411_p3), %s2079_s30, 256  }
 0x827   : > { %2572 = vsyncadd (%p2411_p3), %s2079_s30, 4294967040  ;;  %s3121_s29 = sld [smem:[#allocation12_spill]]  ;;  %p21_p4 = scmp.ge.s32.totalorder %s2692_s23, 4  }
 0x828   : > { %s3122_s17 = smov %s2579_s18  ;;  %s3123_s18 = smov %s2583_s19 }
 0x829   : > { %s3125_s20 = smov %s2692_s23  ;;  %23 = sbr.rel (!%p21_p4) target bundleno = 3 (0x3), region = 156 }
 0x82d   : > { %s3124_s19 = smov %s3121_s29 }
 0x82e   :  { %2084 = vsyncpa [#allocation10], 1 }
 0x82f   :  { %2086 = vsyncpa [#allocation10 + $0x1], 1 }

</bundles_post_ra>
